<compile_context>
chip_gen: v7x
topology: tpu7x:2x2x1
jax: 0.10.0
libtpu: 0.0.40
codegen_flags: <defaults>
</compile_context>

<pallas_src>
import jax
import jax.numpy as jnp
from jax.experimental import pallas as pl
from jax.experimental.pallas import tpu as pltpu

_SQUARINGS = 8       # scale by 2^-8 before the Taylor series
_TAYLOR_TERMS = 12   # Taylor terms for exp of the scaled matrix
_GATHER_TILE = 128   # indices gathered per grid step (lane-dense output tile)


# ----------------------------------------------------------------------------
# Kernel 1: fused block-diagonal expm + power chain  ->  full maps table
# ----------------------------------------------------------------------------
def _precompute_kernel(h_ref, o_ref):
    # h_ref: (D, D) block-diagonal skew-symmetric generator
    # o_ref: (size+1, D, D) with o[0] = I, o[t] = P^t, P = exp(h)
    d = h_ref.shape[-1]
    eye = jnp.eye(d, dtype=jnp.float32)

    # TODO(synk): torch.matrix_exp uses Pade-13; scaling-and-squaring Taylor
    # here (same matmul structure, ~1e-5 numeric difference).
    a = h_ref[...] * (1.0 / (2.0 ** _SQUARINGS))
    term = a
    acc = eye + a
    for k in range(2, _TAYLOR_TERMS + 1):
        term = jnp.dot(term, a, preferred_element_type=jnp.float32) * (1.0 / k)
        acc = acc + term
    for _ in range(_SQUARINGS):
        acc = jnp.dot(acc, acc, preferred_element_type=jnp.float32)

    # Power chain: accumulator stays in vregs, one 64 KiB store per power.
    o_ref[0] = eye
    o_ref[1] = acc

    def body(t, cur):
        nxt = jnp.dot(cur, acc, preferred_element_type=jnp.float32)
        o_ref[t] = nxt
        return nxt

    jax.lax.fori_loop(2, o_ref.shape[0], body, acc)


def precompute_maps_blockdiag(h_bd, size):
    # h_bd: (D, D) block-diagonal skew generator -> (size+1, D, D) maps table
    D = h_bd.shape[-1]
    return pl.pallas_call(
        _precompute_kernel,
        out_shape=jax.ShapeDtypeStruct((size + 1, D, D), jnp.float32),
        in_specs=[pl.BlockSpec(memory_space=pltpu.MemorySpace.VMEM)],
        out_specs=pl.BlockSpec(memory_space=pltpu.MemorySpace.VMEM),
    )(h_bd)


# ----------------------------------------------------------------------------
# Kernel 2: lane-dense gather maps[idx] as an exact one-hot MXU matmul
# ----------------------------------------------------------------------------
def _gather_kernel(idx_ref, maps_ref, o_ref):
    # idx_ref: (TN, 1) int32; maps_ref: (Tp, HDD) f32 (VMEM resident);
    # o_ref: (TN, HDD) f32. one_hot[n, t] = (idx[n] == t); exact in f32.
    tn = idx_ref.shape[0]
    tp = maps_ref.shape[0]
    cols = jax.lax.broadcasted_iota(jnp.int32, (tn, tp), 1)
    onehot = (cols == idx_ref[...]).astype(jnp.float32)          # (TN, Tp)
    o_ref[...] = jnp.dot(onehot, maps_ref[...],
                         preferred_element_type=jnp.float32)


def gather_maps(maps_flat, idx):
    # maps_flat: (T, HDD) f32; idx: (N,) int32 in [0, T); out: (N, HDD) f32
    T, HDD = maps_flat.shape
    N = idx.shape[0]
    tn = _GATHER_TILE
    n_pad = int(pl.cdiv(N, tn)) * tn          # pad indices to tile multiple
    t_pad = int(pl.cdiv(T, 8)) * 8            # pad table rows for clean layout
    idx_p = jnp.zeros((n_pad, 1), jnp.int32).at[:N, 0].set(idx.astype(jnp.int32))
    maps_p = jnp.zeros((t_pad, HDD), jnp.float32).at[:T].set(maps_flat)

    out = pl.pallas_call(
        _gather_kernel,
        out_shape=jax.ShapeDtypeStruct((n_pad, HDD), jnp.float32),
        grid_spec=pltpu.PrefetchScalarGridSpec(
            num_scalar_prefetch=0,
            grid=(n_pad // tn,),
            in_specs=[pl.BlockSpec((tn, 1), lambda i: (i, 0)),
                      pl.BlockSpec((t_pad, HDD), lambda i: (0, 0))],
            out_specs=pl.BlockSpec((tn, HDD), lambda i: (i, 0)),
        ),
        compiler_params=pltpu.CompilerParams(
            dimension_semantics=("parallel",)),
    )(idx_p, maps_p)
    return out[:N]


# ----------------------------------------------------------------------------
# Plain-JAX layout glue (block-diagonal packing / unpacking)
# ----------------------------------------------------------------------------
def _block_diagonal(h):
    # h: (B, d, d) -> (B*d, B*d) block-diagonal
    B, d, _ = h.shape
    bd = jnp.zeros((B, d, B, d), h.dtype)
    bd = bd.at[jnp.arange(B), :, jnp.arange(B), :].set(h)
    return bd.reshape(B * d, B * d)


def _extract_diag_blocks(x, B, d):
    # x: (T, B*d, B*d) -> (T, B, d, d) diagonal blocks
    x4 = x.reshape(x.shape[0], B, d, B, d)
    blocks = x4[:, jnp.arange(B), :, jnp.arange(B), :]   # (B, T, d, d)
    return jnp.moveaxis(blocks, 0, 1)                    # (T, B, d, d)


# ----------------------------------------------------------------------------
# Module wrapper
# ----------------------------------------------------------------------------
class UnitaryGrid:
    def __init__(self, num_axes: int, dim: int, num_heads: int, key) -> None:
        self.dim = dim
        self.num_heads = num_heads
        self.num_axes = num_axes
        # torch.rand(...).softmax(-1).cumsum(-1), deterministically seeded
        raw = jax.random.uniform(key, (num_axes * num_heads, dim, dim),
                                 dtype=jnp.float32)
        self._primitives = jnp.cumsum(jax.nn.softmax(raw, axis=-1), axis=-1)
        self.maps = None
        self._maps_flat = None

    @property
    def hermitian(self):
        # real parameters: mH == transpose
        return self._primitives - jnp.swapaxes(self._primitives, -1, -2)

    @property
    def primitives(self):
        # exp of each d x d skew generator via the block-diagonal kernel
        B, d = self.num_axes * self.num_heads, self.dim
        maps_bd = precompute_maps_blockdiag(_block_diagonal(self.hermitian), 1)
        return _extract_diag_blocks(maps_bd, B, d)[1]

    def precompute(self, size: int) -> None:
        B, d = self.num_axes * self.num_heads, self.dim
        h_bd = _block_diagonal(self.hermitian)              # (B*d, B*d)
        maps_bd = precompute_maps_blockdiag(h_bd, size)     # (size+1, D, D)
        maps = _extract_diag_blocks(maps_bd, B, d)          # (size+1, B, d, d)
        self.maps = maps.reshape(size + 1, self.num_axes, self.num_heads, d, d)
        # lane-dense gather tables, one per grid axis: (T, H*d*d)
        self._maps_flat = tuple(
            self.maps[:, a].reshape(size + 1, self.num_heads * d * d)
            for a in range(self.num_axes))

    def forward(self, xs, ys):
        # equivalent to maps.chunk(2, dim=1) -> maps_x[xs], maps_y[ys]
        B, S = xs.shape
        H, d = self.num_heads, self.dim
        out_x = gather_maps(self._maps_flat[0], xs.reshape(-1).astype(jnp.int32))
        out_y = gather_maps(self._maps_flat[1], ys.reshape(-1).astype(jnp.int32))
        return (out_x.reshape(B, S, H, d, d), out_y.reshape(B, S, H, d, d))


if __name__ == "__main__":
    key = jax.random.PRNGKey(0)
    k_param, k_xs, k_ys = jax.random.split(key, 3)

    num_axes, dim, num_heads = 2, 16, 4
    batch, seq, size = 2, 8, 8

    module = UnitaryGrid(num_axes, dim, num_heads, k_param)
    module.precompute(size)

    xs = jax.random.randint(k_xs, (batch, seq), 0, size + 1, dtype=jnp.int32)
    ys = jax.random.randint(k_ys, (batch, seq), 0, size + 1, dtype=jnp.int32)

    out_x, out_y = module.forward(xs, ys)
    jax.block_until_ready((out_x, out_y))

    assert out_x.shape == (batch, seq, num_heads, dim, dim)
    assert out_y.shape == (batch, seq, num_heads, dim, dim)
    assert out_x.dtype == jnp.float32 and out_y.dtype == jnp.float32

    # light correctness checks: maps[0] is the identity for every head, and
    # the kernel gather matches a host-side table lookup.
    eye = jnp.eye(dim, dtype=jnp.float32)
    assert jnp.allclose(
        module.maps[0],
        jnp.broadcast_to(eye, (num_axes, num_heads, dim, dim)), atol=1e-5)
    ref_x = module.maps[:, 0][xs]            # (batch, seq, H, d, d)
    ref_y = module.maps[:, 1][ys]
    assert jnp.allclose(out_x, ref_x, atol=1e-5)
    assert jnp.allclose(out_y, ref_y, atol=1e-5)

    print("KERNEL_OK")
</pallas_src>

<mosaic_0001>
module attributes {stable_mosaic.version = 11 : i64} {
  func.func @_precompute_kernel(%arg0: memref<128x128xf32, #tpu.memory_space<vmem>>, %arg1: memref<9x128x128xf32, #tpu.memory_space<vmem>>) attributes {dimension_semantics = [], scalar_prefetch = 0 : i64, scratch_operands = 0 : i64, tpu.core_type = #tpu.core_type<tc>} {
    %0 = tpu.iota {dimensions = array<i32: 0>} : vector<128x128xi32>
    %1 = tpu.iota {dimensions = array<i32: 1>} : vector<128x128xi32>
    %c0_i32 = arith.constant 0 : i32
    %2 = vector.broadcast %c0_i32 : i32 to vector<128x128xi32>
    %3 = arith.addi %0, %2 : vector<128x128xi32>
    %4 = arith.cmpi eq, %3, %1 : vector<128x128xi32>
    %5 = arith.extui %4 : vector<128x128xi1> to vector<128x128xi32>
    %6 = arith.sitofp %5 : vector<128x128xi32> to vector<128x128xf32>
    %c0 = arith.constant 0 : index
    %c0_0 = arith.constant 0 : index
    %7 = vector.load %arg0[%c0, %c0_0] : memref<128x128xf32, #tpu.memory_space<vmem>>, vector<128x128xf32>
    %cst = arith.constant 3.906250e-03 : f32
    %8 = vector.broadcast %cst : f32 to vector<128x128xf32>
    %9 = arith.mulf %7, %8 : vector<128x128xf32>
    %10 = arith.addf %6, %9 : vector<128x128xf32>
    %cst_1 = arith.constant dense<0.000000e+00> : vector<128x128xf32>
    %11 = tpu.matmul %9, %9, %cst_1 {dimension_numbers = #tpu.dot_dimension_numbers<[1], [0], [0], [1], [0, 0, 1, 1], [], []>} : vector<128x128xf32>, vector<128x128xf32>, vector<128x128xf32> -> vector<128x128xf32>
    %cst_2 = arith.constant 5.000000e-01 : f32
    %12 = vector.broadcast %cst_2 : f32 to vector<128x128xf32>
    %13 = arith.mulf %11, %12 : vector<128x128xf32>
    %14 = arith.addf %10, %13 : vector<128x128xf32>
    %cst_3 = arith.constant dense<0.000000e+00> : vector<128x128xf32>
    %15 = tpu.matmul %13, %9, %cst_3 {dimension_numbers = #tpu.dot_dimension_numbers<[1], [0], [0], [1], [0, 0, 1, 1], [], []>} : vector<128x128xf32>, vector<128x128xf32>, vector<128x128xf32> -> vector<128x128xf32>
    %cst_4 = arith.constant 0.333333343 : f32
    %16 = vector.broadcast %cst_4 : f32 to vector<128x128xf32>
    %17 = arith.mulf %15, %16 : vector<128x128xf32>
    %18 = arith.addf %14, %17 : vector<128x128xf32>
    %cst_5 = arith.constant dense<0.000000e+00> : vector<128x128xf32>
    %19 = tpu.matmul %17, %9, %cst_5 {dimension_numbers = #tpu.dot_dimension_numbers<[1], [0], [0], [1], [0, 0, 1, 1], [], []>} : vector<128x128xf32>, vector<128x128xf32>, vector<128x128xf32> -> vector<128x128xf32>
    %cst_6 = arith.constant 2.500000e-01 : f32
    %20 = vector.broadcast %cst_6 : f32 to vector<128x128xf32>
    %21 = arith.mulf %19, %20 : vector<128x128xf32>
    %22 = arith.addf %18, %21 : vector<128x128xf32>
    %cst_7 = arith.constant dense<0.000000e+00> : vector<128x128xf32>
    %23 = tpu.matmul %21, %9, %cst_7 {dimension_numbers = #tpu.dot_dimension_numbers<[1], [0], [0], [1], [0, 0, 1, 1], [], []>} : vector<128x128xf32>, vector<128x128xf32>, vector<128x128xf32> -> vector<128x128xf32>
    %cst_8 = arith.constant 2.000000e-01 : f32
    %24 = vector.broadcast %cst_8 : f32 to vector<128x128xf32>
    %25 = arith.mulf %23, %24 : vector<128x128xf32>
    %26 = arith.addf %22, %25 : vector<128x128xf32>
    %cst_9 = arith.constant dense<0.000000e+00> : vector<128x128xf32>
    %27 = tpu.matmul %25, %9, %cst_9 {dimension_numbers = #tpu.dot_dimension_numbers<[1], [0], [0], [1], [0, 0, 1, 1], [], []>} : vector<128x128xf32>, vector<128x128xf32>, vector<128x128xf32> -> vector<128x128xf32>
    %cst_10 = arith.constant 0.166666672 : f32
    %28 = vector.broadcast %cst_10 : f32 to vector<128x128xf32>
    %29 = arith.mulf %27, %28 : vector<128x128xf32>
    %30 = arith.addf %26, %29 : vector<128x128xf32>
    %cst_11 = arith.constant dense<0.000000e+00> : vector<128x128xf32>
    %31 = tpu.matmul %29, %9, %cst_11 {dimension_numbers = #tpu.dot_dimension_numbers<[1], [0], [0], [1], [0, 0, 1, 1], [], []>} : vector<128x128xf32>, vector<128x128xf32>, vector<128x128xf32> -> vector<128x128xf32>
    %cst_12 = arith.constant 0.142857149 : f32
    %32 = vector.broadcast %cst_12 : f32 to vector<128x128xf32>
    %33 = arith.mulf %31, %32 : vector<128x128xf32>
    %34 = arith.addf %30, %33 : vector<128x128xf32>
    %cst_13 = arith.constant dense<0.000000e+00> : vector<128x128xf32>
    %35 = tpu.matmul %33, %9, %cst_13 {dimension_numbers = #tpu.dot_dimension_numbers<[1], [0], [0], [1], [0, 0, 1, 1], [], []>} : vector<128x128xf32>, vector<128x128xf32>, vector<128x128xf32> -> vector<128x128xf32>
    %cst_14 = arith.constant 1.250000e-01 : f32
    %36 = vector.broadcast %cst_14 : f32 to vector<128x128xf32>
    %37 = arith.mulf %35, %36 : vector<128x128xf32>
    %38 = arith.addf %34, %37 : vector<128x128xf32>
    %cst_15 = arith.constant dense<0.000000e+00> : vector<128x128xf32>
    %39 = tpu.matmul %37, %9, %cst_15 {dimension_numbers = #tpu.dot_dimension_numbers<[1], [0], [0], [1], [0, 0, 1, 1], [], []>} : vector<128x128xf32>, vector<128x128xf32>, vector<128x128xf32> -> vector<128x128xf32>
    %cst_16 = arith.constant 0.111111112 : f32
    %40 = vector.broadcast %cst_16 : f32 to vector<128x128xf32>
    %41 = arith.mulf %39, %40 : vector<128x128xf32>
    %42 = arith.addf %38, %41 : vector<128x128xf32>
    %cst_17 = arith.constant dense<0.000000e+00> : vector<128x128xf32>
    %43 = tpu.matmul %41, %9, %cst_17 {dimension_numbers = #tpu.dot_dimension_numbers<[1], [0], [0], [1], [0, 0, 1, 1], [], []>} : vector<128x128xf32>, vector<128x128xf32>, vector<128x128xf32> -> vector<128x128xf32>
    %cst_18 = arith.constant 1.000000e-01 : f32
    %44 = vector.broadcast %cst_18 : f32 to vector<128x128xf32>
    %45 = arith.mulf %43, %44 : vector<128x128xf32>
    %46 = arith.addf %42, %45 : vector<128x128xf32>
    %cst_19 = arith.constant dense<0.000000e+00> : vector<128x128xf32>
    %47 = tpu.matmul %45, %9, %cst_19 {dimension_numbers = #tpu.dot_dimension_numbers<[1], [0], [0], [1], [0, 0, 1, 1], [], []>} : vector<128x128xf32>, vector<128x128xf32>, vector<128x128xf32> -> vector<128x128xf32>
    %cst_20 = arith.constant 0.0909090936 : f32
    %48 = vector.broadcast %cst_20 : f32 to vector<128x128xf32>
    %49 = arith.mulf %47, %48 : vector<128x128xf32>
    %50 = arith.addf %46, %49 : vector<128x128xf32>
    %cst_21 = arith.constant dense<0.000000e+00> : vector<128x128xf32>
    %51 = tpu.matmul %49, %9, %cst_21 {dimension_numbers = #tpu.dot_dimension_numbers<[1], [0], [0], [1], [0, 0, 1, 1], [], []>} : vector<128x128xf32>, vector<128x128xf32>, vector<128x128xf32> -> vector<128x128xf32>
    %cst_22 = arith.constant 0.0833333358 : f32
    %52 = vector.broadcast %cst_22 : f32 to vector<128x128xf32>
    %53 = arith.mulf %51, %52 : vector<128x128xf32>
    %54 = arith.addf %50, %53 : vector<128x128xf32>
    %cst_23 = arith.constant dense<0.000000e+00> : vector<128x128xf32>
    %55 = tpu.matmul %54, %54, %cst_23 {dimension_numbers = #tpu.dot_dimension_numbers<[1], [0], [0], [1], [0, 0, 1, 1], [], []>} : vector<128x128xf32>, vector<128x128xf32>, vector<128x128xf32> -> vector<128x128xf32>
    %cst_24 = arith.constant dense<0.000000e+00> : vector<128x128xf32>
    %56 = tpu.matmul %55, %55, %cst_24 {dimension_numbers = #tpu.dot_dimension_numbers<[1], [0], [0], [1], [0, 0, 1, 1], [], []>} : vector<128x128xf32>, vector<128x128xf32>, vector<128x128xf32> -> vector<128x128xf32>
    %cst_25 = arith.constant dense<0.000000e+00> : vector<128x128xf32>
    %57 = tpu.matmul %56, %56, %cst_25 {dimension_numbers = #tpu.dot_dimension_numbers<[1], [0], [0], [1], [0, 0, 1, 1], [], []>} : vector<128x128xf32>, vector<128x128xf32>, vector<128x128xf32> -> vector<128x128xf32>
    %cst_26 = arith.constant dense<0.000000e+00> : vector<128x128xf32>
    %58 = tpu.matmul %57, %57, %cst_26 {dimension_numbers = #tpu.dot_dimension_numbers<[1], [0], [0], [1], [0, 0, 1, 1], [], []>} : vector<128x128xf32>, vector<128x128xf32>, vector<128x128xf32> -> vector<128x128xf32>
    %cst_27 = arith.constant dense<0.000000e+00> : vector<128x128xf32>
    %59 = tpu.matmul %58, %58, %cst_27 {dimension_numbers = #tpu.dot_dimension_numbers<[1], [0], [0], [1], [0, 0, 1, 1], [], []>} : vector<128x128xf32>, vector<128x128xf32>, vector<128x128xf32> -> vector<128x128xf32>
    %cst_28 = arith.constant dense<0.000000e+00> : vector<128x128xf32>
    %60 = tpu.matmul %59, %59, %cst_28 {dimension_numbers = #tpu.dot_dimension_numbers<[1], [0], [0], [1], [0, 0, 1, 1], [], []>} : vector<128x128xf32>, vector<128x128xf32>, vector<128x128xf32> -> vector<128x128xf32>
    %cst_29 = arith.constant dense<0.000000e+00> : vector<128x128xf32>
    %61 = tpu.matmul %60, %60, %cst_29 {dimension_numbers = #tpu.dot_dimension_numbers<[1], [0], [0], [1], [0, 0, 1, 1], [], []>} : vector<128x128xf32>, vector<128x128xf32>, vector<128x128xf32> -> vector<128x128xf32>
    %cst_30 = arith.constant dense<0.000000e+00> : vector<128x128xf32>
    %62 = tpu.matmul %61, %61, %cst_30 {dimension_numbers = #tpu.dot_dimension_numbers<[1], [0], [0], [1], [0, 0, 1, 1], [], []>} : vector<128x128xf32>, vector<128x128xf32>, vector<128x128xf32> -> vector<128x128xf32>
    %c0_31 = arith.constant 0 : index
    %c0_32 = arith.constant 0 : index
    %c0_33 = arith.constant 0 : index
    %63 = vector.load %arg1[%c0_31, %c0_32, %c0_33] : memref<9x128x128xf32, #tpu.memory_space<vmem>>, vector<1x128x128xf32>
    %64 = vector.shape_cast %63 : vector<1x128x128xf32> to vector<128x128xf32>
    %65 = vector.shape_cast %6 : vector<128x128xf32> to vector<1x128x128xf32>
    tpu.vector_store %arg1[%c0_31, %c0_32, %c0_33], %65 {strides = array<i32>} : memref<9x128x128xf32, #tpu.memory_space<vmem>>, vector<1x128x128xf32>,
    %c1 = arith.constant 1 : index
    %c0_34 = arith.constant 0 : index
    %c0_35 = arith.constant 0 : index
    %66 = vector.load %arg1[%c1, %c0_34, %c0_35] : memref<9x128x128xf32, #tpu.memory_space<vmem>>, vector<1x128x128xf32>
    %67 = vector.shape_cast %66 : vector<1x128x128xf32> to vector<128x128xf32>
    %68 = vector.shape_cast %62 : vector<128x128xf32> to vector<1x128x128xf32>
    tpu.vector_store %arg1[%c1, %c0_34, %c0_35], %68 {strides = array<i32>} : memref<9x128x128xf32, #tpu.memory_space<vmem>>, vector<1x128x128xf32>,
    %c2_i32 = arith.constant 2 : i32
    %c7_i32 = arith.constant 7 : i32
    %69 = arith.addi %c2_i32, %c7_i32 : i32
    %c1_i32 = arith.constant 1 : i32
    %70 = scf.for %arg2 = %c2_i32 to %69 step %c1_i32 iter_args(%arg3 = %62) -> (vector<128x128xf32>)  : i32 {
      %cst_37 = arith.constant dense<0.000000e+00> : vector<128x128xf32>
      %71 = tpu.matmul %arg3, %62, %cst_37 {dimension_numbers = #tpu.dot_dimension_numbers<[1], [0], [0], [1], [0, 0, 1, 1], [], []>} : vector<128x128xf32>, vector<128x128xf32>, vector<128x128xf32> -> vector<128x128xf32>
      %72 = arith.index_cast %arg2 : i32 to index
      %c0_38 = arith.constant 0 : index
      %c0_39 = arith.constant 0 : index
      %73 = vector.load %arg1[%72, %c0_38, %c0_39] : memref<9x128x128xf32, #tpu.memory_space<vmem>>, vector<1x128x128xf32>
      %74 = vector.shape_cast %73 : vector<1x128x128xf32> to vector<128x128xf32>
      %75 = vector.shape_cast %71 : vector<128x128xf32> to vector<1x128x128xf32>
      tpu.vector_store %arg1[%72, %c0_38, %c0_39], %75 {strides = array<i32>} : memref<9x128x128xf32, #tpu.memory_space<vmem>>, vector<1x128x128xf32>,
      scf.yield %71 : vector<128x128xf32>
    }
    %c7_i32_36 = arith.constant 7 : i32
    return
  }
}

</mosaic_0001>

<bundles_post_ra>
// kernel: tpu_custom_call.1
= control target key start
LH: loop header
LB: loop body
LE: loop exit
PB: predicated region body
PF: predicated region fallthrough
CT: control target
= control target key end

     0   :  { %6 = vsyncpa [#allocation3], 0  ;;  %s7390_s0 = inlined_call_operand.hbm [shape: f32[128,128], index: 0, kind: input, shape index: {}]   ;;  %s7391_s1 = inlined_call_operand.hbm [shape: f32[9,128,128], index: 1, kind: output, shape index: {}]  }
   0x1   :  { %7 = vsyncpa [#allocation4], 0  ;;  %s6309_s6 = smov [#allocation2]   ;;  %s6125_s10 = scalar_lea.hbm %s7390_s0, 2048 }
   0x2   :  { %s13_s7 = sshll.u32 %s6309_s6, 4  ;;  %p6126_p0 = scmp.ne.s32.totalorder %s7390_s0, %s6125_s10  ;;  %s14_s7 = int_to_ptr.vmem [resolvable:$true] %s13_s7 }
   0x3   :  { %p6129_p1 = scmp.lt.u32.totalorder %s6125_s10, %s7390_s0 }
   0x5   :  { %p6131_p2 = pnand %p6129_p1, %p6126_p0 }
   0x7   :  { %6134 = shalt.err (!%p6131_p2)
}
   0x8   :  { %s6135_s15 = scalar_lea.vmem %s14_s7, 2048  ;;  %p6140_p4 = scmp.lt.s32.totalorder %s14_s7, %s14_s7 }
   0x9   :  { %p6136_p3 = scmp.ne.s32.totalorder %s14_s7, %s6135_s15  ;;  %p6141_p5 = scmp.lt.s32.totalorder %s6135_s15, %s6135_s15 }
   0xb   :  { %p6142_p6 = por %p6141_p5, %p6140_p4 }
   0xd   :  { %p6143_p7 = pnand %p6142_p6, %p6136_p3 }
   0xf   :  { %6146 = shalt.err (!%p6143_p7)
}
  0x10   :  { %s6310_s16 = smov 128   ;;  %s6311_s17 = smov 8  }
  0x11   :  { %19 = dma.hbm_to_vmem [thread:$0]  %s7390_s0, 2048, %s14_s7, [#allocation3], %s6310_s16, %s6310_s16, %s6311_s17  }
  0x12   :  { %6237 = dma.done.wait [#allocation3], 2048  }
  0x13   :  { %6238 = vsyncadd [#allocation3], 4294965248  ;;  %v23_v0 = vlaneseq  ;;  %v90_v4 = vld [vmem:[#allocation2] sm:$0xff]  ;;  %v91_v5 = vld [vmem:[#allocation2 + $0x8] sm:$0xff]  ;;  %v6312_v7 = vmov 0.0   ;;  %s7290_s0 = smov 2  }
  0x14   :  { %v92_v6 = vld [vmem:[#allocation2 + $0x10] sm:$0xff]  ;;  %v6346_v9 = vmul.f32 0.00390625, %v90_v4  ;;  %v6348_v10 = vmul.f32 0.00390625, %v91_v5  ;;  %v93_v11 = vld [vmem:[#allocation2 + $0x18] sm:$0xff]  ;;  %v94_v13 = vld [vmem:[#allocation2 + $0x20] sm:$0xff] }
  0x15   :  { %v6339_v1 = vshrl.u32 %v23_v0, 7  ;;  %v6341_v2 = vand.u32 127, %v23_v0  ;;  %v6350_v12 = vmul.f32 0.00390625, %v92_v6  ;;  %v95_v14 = vld [vmem:[#allocation2 + $0x28] sm:$0xff]  ;;  %v6352_v15 = vmul.f32 0.00390625, %v93_v11  ;;  %v96_v20 = vld [vmem:[#allocation2 + $0x30] sm:$0xff] }
  0x16   :  { %v6356_v16 = vpack.c.bf16 %v6348_v10, %v6346_v9  ;;  %v6358_v17 = vmul.f32 0.00390625, %v94_v13  ;;  %v6360_v18 = vmul.f32 0.00390625, %v95_v14  ;;  %4224 = vmatprep.mubr.f32.mxu0 %v6346_v9  ;;  %v97_v21 = vld [vmem:[#allocation2 + $0x38] sm:$0xff]  ;;  %v6379_v24 = vmul.f32 0.00390625, %v96_v20  ;;  %v98_v26 = vld [vmem:[#allocation2 + $0x40] sm:$0xff]  ;;  %v99_v27 = vld [vmem:[#allocation2 + $0x48] sm:$0xff] }
  0x17   :  { %v25_v3 = vadd.s32 8, %v6339_v1  ;;  %v6365_v19 = vpack.c.bf16 %v6352_v15, %v6350_v12  ;;  %v6381_v25 = vmul.f32 0.00390625, %v97_v21  ;;  %v6391_v29 = vmul.f32 0.00390625, %v98_v26  ;;  %v100_v31 = vld [vmem:[#allocation2 + $0x50] sm:$0xff]  ;;  %v101_v32 = vld [vmem:[#allocation2 + $0x58] sm:$0xff]  ;;  %v102_v36 = vld [vmem:[#allocation2 + $0x60] sm:$0xff] }
  0x18   :  { %5313 = vmatprep.subr.bf16.mxu0 %v6356_v16  ;;  %5345 = vmatprep.subr.bf16.mxu1 %v6356_v16  ;;  %v6377_v23 = vpack.c.bf16 %v6360_v18, %v6358_v17  ;;  %v6393_v30 = vmul.f32 0.00390625, %v99_v27  ;;  %v6403_v34 = vmul.f32 0.00390625, %v100_v31  ;;  %v6405_v35 = vmul.f32 0.00390625, %v101_v32  ;;  %v103_v37 = vld [vmem:[#allocation2 + $0x68] sm:$0xff]  ;;  %v104_v41 = vld [vmem:[#allocation2 + $0x70] sm:$0xff]  ;;  %v105_v42 = vld [vmem:[#allocation2 + $0x78] sm:$0xff] }
  0x19   :  { %vm43_vm0 = vcmp.eq.s32.totalorder %v25_v3, %v6341_v2  ;;  %5315 = vmatpush3.bf16.msra.mxu0 %v6356_v16  ;;  %5347 = vmatpush3.bf16.msra.mxu1 %v6356_v16  ;;  %v6389_v28 = vpack.c.bf16 %v6381_v25, %v6379_v24  ;;  %v6415_v39 = vmul.f32 0.00390625, %v102_v36  ;;  %v6417_v40 = vmul.f32 0.00390625, %v103_v37 }
  0x1a   :  { %v3536_v8 = vsel %vm43_vm0, 1.0, %v6312_v7  ;;  %5317 = vmatprep.subr.bf16.mxu0 %v6365_v19  ;;  %5349 = vmatprep.subr.bf16.mxu1 %v6365_v19  ;;  %v6401_v33 = vpack.c.bf16 %v6393_v30, %v6391_v29  ;;  %v6413_v38 = vpack.c.bf16 %v6405_v35, %v6403_v34  ;;  %v6427_v44 = vmul.f32 0.00390625, %v104_v41 }
  0x1b   :  { %3246 = vst [vmem:[#allocation5 + $0x8] sm:$0xff] %v3536_v8  ;;  %v6372_v22 = vadd.f32 %v3536_v8, %v6348_v10  ;;  %v6425_v43 = vpack.c.bf16 %v6417_v40, %v6415_v39  ;;  %v6429_v45 = vmul.f32 0.00390625, %v105_v42  ;;  %vm42_vm1 = vcmp.eq.s32.totalorder %v6339_v1, %v6341_v2 }
  0x1c   :  { %v3535_v47 = vsel %vm42_vm1, 1.0, %v6312_v7  ;;  %v27_v48 = vadd.s32 24, %v6339_v1  ;;  %v26_v49 = vadd.s32 16, %v6339_v1  ;;  %v29_v52 = vadd.s32 40, %v6339_v1 }
  0x1d   :  { %5319 = vmatpush3.bf16.msra.mxu0 %v6365_v19  ;;  %5351 = vmatpush3.bf16.msra.mxu1 %v6365_v19  ;;  %v6437_v46 = vpack.c.bf16 %v6429_v45, %v6427_v44  ;;  %3245 = vst [vmem:[#allocation5] sm:$0xff] %v3535_v47  ;;  %v28_v53 = vadd.s32 32, %v6339_v1  ;;  %v31_v56 = vadd.s32 56, %v6339_v1  ;;  %v30_v57 = vadd.s32 48, %v6339_v1 }
  0x1e   :  { %5321 = vmatprep.subr.bf16.mxu0 %v6377_v23  ;;  %5353 = vmatprep.subr.bf16.mxu1 %v6377_v23  ;;  %vm45_vm2 = vcmp.eq.s32.totalorder %v27_v48, %v6341_v2  ;;  %vm44_vm3 = vcmp.eq.s32.totalorder %v26_v49, %v6341_v2  ;;  %vm47_vm4 = vcmp.eq.s32.totalorder %v29_v52, %v6341_v2  ;;  %v33_v60 = vadd.s32 72, %v6339_v1 }
  0x1f   :  { %v3538_v50 = vsel %vm45_vm2, 1.0, %v6312_v7  ;;  %v3537_v51 = vsel %vm44_vm3, 1.0, %v6312_v7  ;;  %v3540_v54 = vsel %vm47_vm4, 1.0, %v6312_v7  ;;  %vm46_vm5 = vcmp.eq.s32.totalorder %v28_v53, %v6341_v2 }
  0x20   :  { %3248 = vst [vmem:[#allocation5 + $0x18] sm:$0xff] %v3538_v50  ;;  %3247 = vst [vmem:[#allocation5 + $0x10] sm:$0xff] %v3537_v51  ;;  %v6494_v55 = vsel %vm46_vm5, 1.0, %v6312_v7  ;;  %vm49_vm6 = vcmp.eq.s32.totalorder %v31_v56, %v6341_v2  ;;  %vm48_vm7 = vcmp.eq.s32.totalorder %v30_v57, %v6341_v2  ;;  %v32_v61 = vadd.s32 64, %v6339_v1 }
  0x21   :  { %5323 = vmatpush3.bf16.msra.mxu0 %v6377_v23  ;;  %5355 = vmatpush3.bf16.msra.mxu1 %v6377_v23  ;;  %3250 = vst [vmem:[#allocation5 + $0x28] sm:$0xff] %v3540_v54  ;;  %3249 = vst [vmem:[#allocation5 + $0x20] sm:$0xff] %v6494_v55  ;;  %v6501_v58 = vsel %vm49_vm6, 1.0, %v6312_v7  ;;  %v6506_v59 = vsel %vm48_vm7, 1.0, %v6312_v7  ;;  %vm51_vm8 = vcmp.eq.s32.totalorder %v33_v60, %v6341_v2  ;;  %v35_v0 = vadd.s32 88, %v6339_v1 }
  0x22   :  { %5325 = vmatprep.subr.bf16.mxu0 %v6389_v28  ;;  %5357 = vmatprep.subr.bf16.mxu1 %v6389_v28  ;;  %3252 = vst [vmem:[#allocation5 + $0x38] sm:$0xff] %v6501_v58  ;;  %3251 = vst [vmem:[#allocation5 + $0x30] sm:$0xff] %v6506_v59  ;;  %v6513_v62 = vsel %vm51_vm8, 1.0, %v6312_v7  ;;  %vm50_vm9 = vcmp.eq.s32.totalorder %v32_v61, %v6341_v2  ;;  %v34_v3 = vadd.s32 80, %v6339_v1  ;;  %v37_v6 = vadd.s32 104, %v6339_v1 }
  0x23   :  { %3254 = vst [vmem:[#allocation5 + $0x48] sm:$0xff] %v6513_v62  ;;  %v6518_v63 = vsel %vm50_vm9, 1.0, %v6312_v7  ;;  %vm53_vm10 = vcmp.eq.s32.totalorder %v35_v0, %v6341_v2  ;;  %v36_v8 = vadd.s32 96, %v6339_v1  ;;  %v39_v13 = vadd.s32 120, %v6339_v1 }
  0x24   :  { %3253 = vst [vmem:[#allocation5 + $0x40] sm:$0xff] %v6518_v63  ;;  %v6525_v4 = vsel %vm53_vm10, 1.0, %v6312_v7  ;;  %vm52_vm11 = vcmp.eq.s32.totalorder %v34_v3, %v6341_v2  ;;  %vm55_vm12 = vcmp.eq.s32.totalorder %v37_v6, %v6341_v2  ;;  %v38_v14 = vadd.s32 112, %v6339_v1 }
  0x25   :  { %5327 = vmatpush3.bf16.msra.mxu0 %v6389_v28  ;;  %5359 = vmatpush3.bf16.msra.mxu1 %v6389_v28  ;;  %3256 = vst [vmem:[#allocation5 + $0x58] sm:$0xff] %v6525_v4  ;;  %v6530_v5 = vsel %vm52_vm11, 1.0, %v6312_v7  ;;  %vm54_vm13 = vcmp.eq.s32.totalorder %v36_v8, %v6341_v2  ;;  %vm57_vm14 = vcmp.eq.s32.totalorder %v39_v13, %v6341_v2 }
  0x26   :  { %5329 = vmatprep.subr.bf16.mxu0 %v6401_v33  ;;  %5361 = vmatprep.subr.bf16.mxu1 %v6401_v33  ;;  %3255 = vst [vmem:[#allocation5 + $0x50] sm:$0xff] %v6530_v5  ;;  %v6542_v11 = vsel %vm54_vm13, 1.0, %v6312_v7  ;;  %v6549_v20 = vsel %vm57_vm14, 1.0, %v6312_v7  ;;  %vm56_vm15 = vcmp.eq.s32.totalorder %v38_v14, %v6341_v2  ;;  %v122_v27 = vadd.f32 %v3535_v47, %v6346_v9 }
  0x27   :  { %3257 = vst [vmem:[#allocation5 + $0x60] sm:$0xff] %v6542_v11  ;;  %3260 = vst [vmem:[#allocation5 + $0x78] sm:$0xff] %v6549_v20  ;;  %v6554_v21 = vsel %vm56_vm15, 1.0, %v6312_v7  ;;  %v125_v37 = vadd.f32 %v3538_v50, %v6352_v15  ;;  %v127_v47 = vadd.f32 %v3540_v54, %v6360_v18  ;;  %v126_v50 = vadd.f32 %v6494_v55, %v6358_v17 }
  0x28   :  { %3259 = vst [vmem:[#allocation5 + $0x70] sm:$0xff] %v6554_v21 }
  0x29   :  { %5331 = vmatpush3.bf16.msra.mxu0 %v6401_v33  ;;  %5363 = vmatpush3.bf16.msra.mxu1 %v6401_v33 }
  0x2a   :  { %5333 = vmatprep.subr.bf16.mxu0 %v6413_v38  ;;  %5365 = vmatprep.subr.bf16.mxu1 %v6413_v38 }
  0x2d   :  { %5335 = vmatpush3.bf16.msra.mxu0 %v6413_v38  ;;  %5367 = vmatpush3.bf16.msra.mxu1 %v6413_v38 }
  0x2e   :  { %5337 = vmatprep.subr.bf16.mxu0 %v6425_v43  ;;  %5369 = vmatprep.subr.bf16.mxu1 %v6425_v43 }
  0x31   :  { %5339 = vmatpush3.bf16.msra.mxu0 %v6425_v43  ;;  %5371 = vmatpush3.bf16.msra.mxu1 %v6425_v43 }
  0x32   :  { %5341 = vmatprep.subr.bf16.mxu0 %v6437_v46  ;;  %5373 = vmatprep.subr.bf16.mxu1 %v6437_v46 }
  0x35   :  { %5343 = vmatpush3.bf16.msra.mxu0 %v6437_v46  ;;  %5375 = vmatpush3.bf16.msra.mxu1 %v6437_v46 }
  0x36   :  { %5377 = vmatprep.subr.bf16.mxu0 %v6356_v16  ;;  %5409 = vmatprep.subr.bf16.mxu1 %v6356_v16 }
  0x38   :  { %4225 = vmatmul.mubr.f32.vlgmr.msra.gmra.mrb[0].mxu0 %v6348_v10  ;;  %v6537_v10 = vsel %vm55_vm12, 1.0, %v6312_v7  ;;  %v124_v7 = vadd.f32 %v3537_v51, %v6350_v12 }
  0x39   :  { %4227 = vmatprep.mubr.f32.mxu0 %v6350_v12  ;;  %5379 = vmatpush3.bf16.msra.mxu0 %v6356_v16  ;;  %3258 = vst [vmem:[#allocation5 + $0x68] sm:$0xff] %v6537_v10 }
  0x3a   :  { %5381 = vmatprep.subr.bf16.mxu0 %v6365_v19 }
  0x3c   :  { %4228 = vmatmul.mubr.f32.gmra.mrb[2].mxu0 %v6352_v15 }
  0x3d   :  { %4230 = vmatprep.mubr.f32.mxu0 %v6358_v17  ;;  %5383 = vmatpush3.bf16.msra.mxu0 %v6365_v19  ;;  %v128_v17 = vadd.f32 %v6506_v59, %v6379_v24 }
  0x3e   :  { %5385 = vmatprep.subr.bf16.mxu0 %v6377_v23 }
  0x40   :  { %4231 = vmatmul.mubr.f32.gmra.mrb[4].mxu0 %v6360_v18  ;;  %v129_v18 = vadd.f32 %v6501_v58, %v6381_v25 }
  0x41   :  { %4233 = vmatprep.mubr.f32.mxu0 %v6379_v24  ;;  %5387 = vmatpush3.bf16.msra.mxu0 %v6377_v23  ;;  %v130_v24 = vadd.f32 %v6518_v63, %v6391_v29 }
  0x42   :  { %5389 = vmatprep.subr.bf16.mxu0 %v6389_v28 }
  0x44   :  { %4234 = vmatmul.mubr.f32.gmra.mrb[6].mxu0 %v6381_v25  ;;  %v131_v25 = vadd.f32 %v6513_v62, %v6393_v30 }
  0x45   :  { %4236 = vmatprep.mubr.f32.mxu0 %v6391_v29  ;;  %5391 = vmatpush3.bf16.msra.mxu0 %v6389_v28  ;;  %v132_v29 = vadd.f32 %v6530_v5, %v6403_v34 }
  0x46   :  { %5393 = vmatprep.subr.bf16.mxu0 %v6401_v33 }
  0x48   :  { %4237 = vmatmul.mubr.f32.gmra.mrb[8].mxu0 %v6393_v30  ;;  %v133_v30 = vadd.f32 %v6525_v4, %v6405_v35 }
  0x49   :  { %4239 = vmatprep.mubr.f32.mxu0 %v6403_v34  ;;  %5395 = vmatpush3.bf16.msra.mxu0 %v6401_v33  ;;  %v134_v34 = vadd.f32 %v6542_v11, %v6415_v39 }
  0x4a   :  { %5397 = vmatprep.subr.bf16.mxu0 %v6413_v38 }
  0x4c   :  { %4240 = vmatmul.mubr.f32.gmra.mrb[10].mxu0 %v6405_v35  ;;  %v135_v35 = vadd.f32 %v6537_v10, %v6417_v40 }
  0x4d   :  { %4242 = vmatprep.mubr.f32.mxu0 %v6415_v39  ;;  %5399 = vmatpush3.bf16.msra.mxu0 %v6413_v38  ;;  %v136_v39 = vadd.f32 %v6554_v21, %v6427_v44 }
  0x4e   :  { %5401 = vmatprep.subr.bf16.mxu0 %v6425_v43 }
  0x50   :  { %4243 = vmatmul.mubr.f32.gmra.mrb[12].mxu0 %v6417_v40  ;;  %v137_v40 = vadd.f32 %v6549_v20, %v6429_v45 }
  0x51   :  { %4245 = vmatprep.mubr.f32.mxu0 %v6427_v44  ;;  %5403 = vmatpush3.bf16.msra.mxu0 %v6425_v43 }
  0x52   :  { %5405 = vmatprep.subr.bf16.mxu0 %v6437_v46 }
  0x54   :  { %4246 = vmatmul.mubr.f32.gmra.mrb[14].mxu0 %v6429_v45 }
  0x55   :  { %5407 = vmatpush3.bf16.msra.mxu0 %v6437_v46 }
  0x56   :  { %5441 = vmatprep.subr.bf16.mxu0 %v6356_v16 }
 0x10b   :  { %v4226_v26 = vpop.f32.mrb[0].mxu0 }
 0x10c   :  { %v284_v31 = vmul.f32 0.5, %v4226_v26  ;;  %v204_v32 = vpop.f32.mrb[1].mxu0 }
 0x10d   :  { %v283_v1 = vmul.f32 0.5, %v204_v32 }
 0x10e   :  { %v6559_v36 = vadd.f32 %v284_v31, %v6372_v22 }
 0x10f   :  { %v6562_v41 = vadd.f32 %v283_v1, %v122_v27  ;;  %v4229_v2 = vpop.f32.mrb[2].mxu0  ;;  %4280 = vmatprep.mubr.f32.mxu1 %v283_v1 }
 0x110   :  { %v286_v42 = vmul.f32 0.5, %v4229_v2  ;;  %v214_v48 = vpop.f32.mrb[3].mxu0  ;;  %4281 = vmatmul.mubr.f32.vlgmr.msra.gmra.mrb[0].mxu1 %v284_v31 }
 0x111   :  { %v285_v49 = vmul.f32 0.5, %v214_v48  ;;  %5411 = vmatpush3.bf16.msra.mxu1 %v6356_v16 }
 0x112   :  { %v6566_v9 = vadd.f32 %v286_v42, %v125_v37  ;;  %5413 = vmatprep.subr.bf16.mxu1 %v6365_v19 }
 0x113   :  { %v6570_v22 = vadd.f32 %v285_v49, %v124_v7  ;;  %v4232_v15 = vpop.f32.mrb[4].mxu0  ;;  %4283 = vmatprep.mubr.f32.mxu1 %v285_v49 }
 0x114   :  { %v288_v12 = vmul.f32 0.5, %v4232_v15  ;;  %v224_v51 = vpop.f32.mrb[5].mxu0  ;;  %4284 = vmatmul.mubr.f32.gmra.mrb[2].mxu1 %v286_v42 }
 0x115   :  { %v287_v52 = vmul.f32 0.5, %v224_v51  ;;  %5415 = vmatpush3.bf16.msra.mxu1 %v6365_v19 }
 0x116   :  { %v6575_v53 = vadd.f32 %v288_v12, %v127_v47  ;;  %5417 = vmatprep.subr.bf16.mxu1 %v6377_v23 }
 0x117   :  { %v6580_v54 = vadd.f32 %v287_v52, %v126_v50  ;;  %v4235_v56 = vpop.f32.mrb[6].mxu0  ;;  %4286 = vmatprep.mubr.f32.mxu1 %v287_v52 }
 0x118   :  { %v290_v55 = vmul.f32 0.5, %v4235_v56  ;;  %v234_v57 = vpop.f32.mrb[7].mxu0  ;;  %4287 = vmatmul.mubr.f32.gmra.mrb[4].mxu1 %v288_v12 }
 0x119   :  { %v289_v60 = vmul.f32 0.5, %v234_v57  ;;  %5419 = vmatpush3.bf16.msra.mxu1 %v6377_v23 }
 0x11a   :  { %v6585_v61 = vadd.f32 %v290_v55, %v129_v18  ;;  %5421 = vmatprep.subr.bf16.mxu1 %v6389_v28 }
 0x11b   :  { %v6590_v58 = vadd.f32 %v289_v60, %v128_v17  ;;  %v4238_v0 = vpop.f32.mrb[8].mxu0  ;;  %4289 = vmatprep.mubr.f32.mxu1 %v289_v60 }
 0x11c   :  { %v292_v59 = vmul.f32 0.5, %v4238_v0  ;;  %v244_v3 = vpop.f32.mrb[9].mxu0  ;;  %4290 = vmatmul.mubr.f32.gmra.mrb[6].mxu1 %v290_v55 }
 0x11d   :  { %v291_v6 = vmul.f32 0.5, %v244_v3  ;;  %5423 = vmatpush3.bf16.msra.mxu1 %v6389_v28 }
 0x11e   :  { %v6595_v8 = vadd.f32 %v292_v59, %v131_v25  ;;  %5425 = vmatprep.subr.bf16.mxu1 %v6401_v33 }
 0x11f   :  { %v6600_v62 = vadd.f32 %v291_v6, %v130_v24  ;;  %v4241_v13 = vpop.f32.mrb[10].mxu0  ;;  %4292 = vmatprep.mubr.f32.mxu1 %v291_v6 }
 0x120   :  { %v294_v63 = vmul.f32 0.5, %v4241_v13  ;;  %v254_v14 = vpop.f32.mrb[11].mxu0  ;;  %4293 = vmatmul.mubr.f32.gmra.mrb[8].mxu1 %v292_v59 }
 0x121   :  { %v293_v26 = vmul.f32 0.5, %v254_v14  ;;  %5427 = vmatpush3.bf16.msra.mxu1 %v6401_v33 }
 0x122   :  { %v6605_v27 = vadd.f32 %v294_v63, %v133_v30  ;;  %5429 = vmatprep.subr.bf16.mxu1 %v6413_v38 }
 0x123   :  { %v6610_v4 = vadd.f32 %v293_v26, %v132_v29  ;;  %v4244_v31 = vpop.f32.mrb[12].mxu0  ;;  %4295 = vmatprep.mubr.f32.mxu1 %v293_v26 }
 0x124   :  { %v296_v5 = vmul.f32 0.5, %v4244_v31  ;;  %v264_v32 = vpop.f32.mrb[13].mxu0  ;;  %4296 = vmatmul.mubr.f32.gmra.mrb[10].mxu1 %v294_v63 }
 0x125   :  { %v295_v1 = vmul.f32 0.5, %v264_v32  ;;  %5431 = vmatpush3.bf16.msra.mxu1 %v6413_v38 }
 0x126   :  { %v6615_v37 = vadd.f32 %v296_v5, %v135_v35  ;;  %5433 = vmatprep.subr.bf16.mxu1 %v6425_v43 }
 0x127   :  { %v6620_v10 = vadd.f32 %v295_v1, %v134_v34  ;;  %v4247_v2 = vpop.f32.mrb[14].mxu0  ;;  %4298 = vmatprep.mubr.f32.mxu1 %v295_v1 }
 0x128   :  { %v298_v11 = vmul.f32 0.5, %v4247_v2  ;;  %v274_v7 = vpop.f32.mrb[15].mxu0  ;;  %4299 = vmatmul.mubr.f32.gmra.mrb[12].mxu1 %v296_v5 }
 0x129   :  { %v297_v42 = vmul.f32 0.5, %v274_v7  ;;  %5435 = vmatpush3.bf16.msra.mxu1 %v6425_v43 }
 0x12a   :  { %v6625_v48 = vadd.f32 %v298_v11, %v137_v40  ;;  %5437 = vmatprep.subr.bf16.mxu1 %v6437_v46 }
 0x12b   :  { %v6628_v45 = vadd.f32 %v297_v42, %v136_v39  ;;  %4301 = vmatprep.mubr.f32.mxu1 %v297_v42 }
 0x12c   :  { %4302 = vmatmul.mubr.f32.gmra.mrb[14].mxu1 %v298_v11 }
 0x12d   :  { %5439 = vmatpush3.bf16.msra.mxu1 %v6437_v46 }
 0x12e   :  { %5473 = vmatprep.subr.bf16.mxu1 %v6356_v16 }
 0x1e3   :  { %v4282_v20 = vpop.f32.mrb[0].mxu1 }
 0x1e4   :  { %v461_v44 = vmul.f32 0.33333334, %v4282_v20  ;;  %v381_v21 = vpop.f32.mrb[1].mxu1 }
 0x1e5   :  { %v460_v49 = vmul.f32 0.33333334, %v381_v21 }
 0x1e6   :  { %v6633_v47 = vadd.f32 %v461_v44, %v6559_v36 }
 0x1e7   :  { %v6636_v15 = vadd.f32 %v460_v49, %v6562_v41  ;;  %v4285_v50 = vpop.f32.mrb[2].mxu1  ;;  %4336 = vmatprep.mubr.f32.mxu0 %v460_v49 }
 0x1e8   :  { %v463_v12 = vmul.f32 0.33333334, %v4285_v50  ;;  %v391_v51 = vpop.f32.mrb[3].mxu1  ;;  %4337 = vmatmul.mubr.f32.vlgmr.msra.gmra.mrb[16].mxu0 %v461_v44 }
 0x1e9   :  { %v462_v52 = vmul.f32 0.33333334, %v391_v51  ;;  %5443 = vmatpush3.bf16.msra.mxu0 %v6356_v16 }
 0x1ea   :  { %v6640_v18 = vadd.f32 %v463_v12, %v6566_v9  ;;  %5445 = vmatprep.subr.bf16.mxu0 %v6365_v19 }
 0x1eb   :  { %v6644_v56 = vadd.f32 %v462_v52, %v6570_v22  ;;  %v4288_v36 = vpop.f32.mrb[4].mxu1  ;;  %4339 = vmatprep.mubr.f32.mxu0 %v462_v52 }
 0x1ec   :  { %v465_v41 = vmul.f32 0.33333334, %v4288_v36  ;;  %v401_v17 = vpop.f32.mrb[5].mxu1  ;;  %4340 = vmatmul.mubr.f32.gmra.mrb[18].mxu0 %v463_v12 }
 0x1ed   :  { %v464_v55 = vmul.f32 0.33333334, %v401_v17  ;;  %5447 = vmatpush3.bf16.msra.mxu0 %v6365_v19 }
 0x1ee   :  { %v6648_v57 = vadd.f32 %v465_v41, %v6575_v53  ;;  %5449 = vmatprep.subr.bf16.mxu0 %v6377_v23 }
 0x1ef   :  { %v6652_v9 = vadd.f32 %v464_v55, %v6580_v54  ;;  %v4291_v60 = vpop.f32.mrb[6].mxu1  ;;  %4342 = vmatprep.mubr.f32.mxu0 %v464_v55 }
 0x1f0   :  { %v467_v22 = vmul.f32 0.33333334, %v4291_v60  ;;  %v411_v25 = vpop.f32.mrb[7].mxu1  ;;  %4343 = vmatmul.mubr.f32.gmra.mrb[20].mxu0 %v465_v41 }
 0x1f1   :  { %v466_v0 = vmul.f32 0.33333334, %v411_v25  ;;  %5451 = vmatpush3.bf16.msra.mxu0 %v6377_v23 }
 0x1f2   :  { %v6656_v24 = vadd.f32 %v467_v22, %v6585_v61  ;;  %5453 = vmatprep.subr.bf16.mxu0 %v6389_v28 }
 0x1f3   :  { %v6660_v53 = vadd.f32 %v466_v0, %v6590_v58  ;;  %v4294_v59 = vpop.f32.mrb[8].mxu1  ;;  %4345 = vmatprep.mubr.f32.mxu0 %v466_v0 }
 0x1f4   :  { %v469_v54 = vmul.f32 0.33333334, %v4294_v59  ;;  %v421_v3 = vpop.f32.mrb[9].mxu1  ;;  %4346 = vmatmul.mubr.f32.gmra.mrb[22].mxu0 %v467_v22 }
 0x1f5   :  { %v468_v6 = vmul.f32 0.33333334, %v421_v3  ;;  %5455 = vmatpush3.bf16.msra.mxu0 %v6389_v28 }
 0x1f6   :  { %v6664_v30 = vadd.f32 %v469_v54, %v6595_v8  ;;  %5457 = vmatprep.subr.bf16.mxu0 %v6401_v33 }
 0x1f7   :  { %v6668_v61 = vadd.f32 %v468_v6, %v6600_v62  ;;  %v4297_v13 = vpop.f32.mrb[10].mxu1  ;;  %4348 = vmatprep.mubr.f32.mxu0 %v468_v6 }
 0x1f8   :  { %v471_v58 = vmul.f32 0.33333334, %v4297_v13  ;;  %v431_v29 = vpop.f32.mrb[11].mxu1  ;;  %4349 = vmatmul.mubr.f32.gmra.mrb[24].mxu0 %v469_v54 }
 0x1f9   :  { %v470_v63 = vmul.f32 0.33333334, %v431_v29  ;;  %5459 = vmatpush3.bf16.msra.mxu0 %v6401_v33 }
 0x1fa   :  { %v6672_v14 = vadd.f32 %v471_v58, %v6605_v27  ;;  %5461 = vmatprep.subr.bf16.mxu0 %v6413_v38 }
 0x1fb   :  { %v6676_v8 = vadd.f32 %v470_v63, %v6610_v4  ;;  %v4300_v26 = vpop.f32.mrb[12].mxu1  ;;  %4351 = vmatprep.mubr.f32.mxu0 %v470_v63 }
 0x1fc   :  { %v473_v62 = vmul.f32 0.33333334, %v4300_v26  ;;  %v441_v35 = vpop.f32.mrb[13].mxu1  ;;  %4352 = vmatmul.mubr.f32.gmra.mrb[26].mxu0 %v471_v58 }
 0x1fd   :  { %v472_v31 = vmul.f32 0.33333334, %v441_v35  ;;  %5463 = vmatpush3.bf16.msra.mxu0 %v6413_v38 }
 0x1fe   :  { %v6680_v34 = vadd.f32 %v473_v62, %v6615_v37  ;;  %5465 = vmatprep.subr.bf16.mxu0 %v6425_v43 }
 0x1ff   :  { %v6684_v27 = vadd.f32 %v472_v31, %v6620_v10  ;;  %v4303_v5 = vpop.f32.mrb[14].mxu1  ;;  %4354 = vmatprep.mubr.f32.mxu0 %v472_v31 }
 0x200   :  { %v475_v4 = vmul.f32 0.33333334, %v4303_v5  ;;  %v451_v32 = vpop.f32.mrb[15].mxu1  ;;  %4355 = vmatmul.mubr.f32.gmra.mrb[28].mxu0 %v473_v62 }
 0x201   :  { %v474_v1 = vmul.f32 0.33333334, %v451_v32  ;;  %5467 = vmatpush3.bf16.msra.mxu0 %v6425_v43 }
 0x202   :  { %v6688_v40 = vadd.f32 %v475_v4, %v6625_v48  ;;  %5469 = vmatprep.subr.bf16.mxu0 %v6437_v46 }
 0x203   :  { %v6692_v37 = vadd.f32 %v474_v1, %v6628_v45  ;;  %4357 = vmatprep.mubr.f32.mxu0 %v474_v1 }
 0x204   :  { %4358 = vmatmul.mubr.f32.gmra.mrb[30].mxu0 %v475_v4 }
 0x205   :  { %5471 = vmatpush3.bf16.msra.mxu0 %v6437_v46 }
 0x206   :  { %5505 = vmatprep.subr.bf16.mxu0 %v6356_v16 }
 0x2bb   :  { %v4338_v10 = vpop.f32.mrb[16].mxu0 }
 0x2bc   :  { %v638_v2 = vmul.f32 0.25, %v4338_v10  ;;  %v558_v39 = vpop.f32.mrb[17].mxu0 }
 0x2bd   :  { %v637_v11 = vmul.f32 0.25, %v558_v39 }
 0x2be   :  { %v6697_v7 = vadd.f32 %v638_v2, %v6633_v47 }
 0x2bf   :  { %v6700_v42 = vadd.f32 %v637_v11, %v6636_v15  ;;  %v4341_v48 = vpop.f32.mrb[18].mxu0  ;;  %4392 = vmatprep.mubr.f32.mxu1 %v637_v11 }
 0x2c0   :  { %v640_v45 = vmul.f32 0.25, %v4341_v48  ;;  %v568_v20 = vpop.f32.mrb[19].mxu0  ;;  %4393 = vmatmul.mubr.f32.vlgmr.msra.gmra.mrb[16].mxu1 %v638_v2 }
 0x2c1   :  { %v639_v44 = vmul.f32 0.25, %v568_v20  ;;  %5475 = vmatpush3.bf16.msra.mxu1 %v6356_v16 }
 0x2c2   :  { %v6704_v21 = vadd.f32 %v640_v45, %v6640_v18  ;;  %5477 = vmatprep.subr.bf16.mxu1 %v6365_v19 }
 0x2c3   :  { %v6708_v49 = vadd.f32 %v639_v44, %v6644_v56  ;;  %v4344_v47 = vpop.f32.mrb[20].mxu0  ;;  %4395 = vmatprep.mubr.f32.mxu1 %v639_v44 }
 0x2c4   :  { %v642_v15 = vmul.f32 0.25, %v4344_v47  ;;  %v578_v50 = vpop.f32.mrb[21].mxu0  ;;  %4396 = vmatmul.mubr.f32.gmra.mrb[18].mxu1 %v640_v45 }
 0x2c5   :  { %v641_v12 = vmul.f32 0.25, %v578_v50  ;;  %5479 = vmatpush3.bf16.msra.mxu1 %v6365_v19 }
 0x2c6   :  { %v6712_v51 = vadd.f32 %v642_v15, %v6648_v57  ;;  %5481 = vmatprep.subr.bf16.mxu1 %v6377_v23 }
 0x2c7   :  { %v6716_v52 = vadd.f32 %v641_v12, %v6652_v9  ;;  %v4347_v18 = vpop.f32.mrb[22].mxu0  ;;  %4398 = vmatprep.mubr.f32.mxu1 %v641_v12 }
 0x2c8   :  { %v644_v56 = vmul.f32 0.25, %v4347_v18  ;;  %v588_v36 = vpop.f32.mrb[23].mxu0  ;;  %4399 = vmatmul.mubr.f32.gmra.mrb[20].mxu1 %v642_v15 }
 0x2c9   :  { %v643_v41 = vmul.f32 0.25, %v588_v36  ;;  %5483 = vmatpush3.bf16.msra.mxu1 %v6377_v23 }
 0x2ca   :  { %v6720_v17 = vadd.f32 %v644_v56, %v6656_v24  ;;  %5485 = vmatprep.subr.bf16.mxu1 %v6389_v28 }
 0x2cb   :  { %v6724_v55 = vadd.f32 %v643_v41, %v6660_v53  ;;  %v4350_v57 = vpop.f32.mrb[24].mxu0  ;;  %4401 = vmatprep.mubr.f32.mxu1 %v643_v41 }
 0x2cc   :  { %v646_v9 = vmul.f32 0.25, %v4350_v57  ;;  %v598_v60 = vpop.f32.mrb[25].mxu0  ;;  %4402 = vmatmul.mubr.f32.gmra.mrb[22].mxu1 %v644_v56 }
 0x2cd   :  { %v645_v22 = vmul.f32 0.25, %v598_v60  ;;  %5487 = vmatpush3.bf16.msra.mxu1 %v6389_v28 }
 0x2ce   :  { %v6728_v25 = vadd.f32 %v646_v9, %v6664_v30  ;;  %5489 = vmatprep.subr.bf16.mxu1 %v6401_v33 }
 0x2cf   :  { %v6732_v0 = vadd.f32 %v645_v22, %v6668_v61  ;;  %v4353_v24 = vpop.f32.mrb[26].mxu0  ;;  %4404 = vmatprep.mubr.f32.mxu1 %v645_v22 }
 0x2d0   :  { %v648_v53 = vmul.f32 0.25, %v4353_v24  ;;  %v608_v59 = vpop.f32.mrb[27].mxu0  ;;  %4405 = vmatmul.mubr.f32.gmra.mrb[24].mxu1 %v646_v9 }
 0x2d1   :  { %v647_v54 = vmul.f32 0.25, %v608_v59  ;;  %5491 = vmatpush3.bf16.msra.mxu1 %v6401_v33 }
 0x2d2   :  { %v6736_v3 = vadd.f32 %v648_v53, %v6672_v14  ;;  %5493 = vmatprep.subr.bf16.mxu1 %v6413_v38 }
 0x2d3   :  { %v6740_v6 = vadd.f32 %v647_v54, %v6676_v8  ;;  %v4356_v30 = vpop.f32.mrb[28].mxu0  ;;  %4407 = vmatprep.mubr.f32.mxu1 %v647_v54 }
 0x2d4   :  { %v650_v61 = vmul.f32 0.25, %v4356_v30  ;;  %v618_v13 = vpop.f32.mrb[29].mxu0  ;;  %4408 = vmatmul.mubr.f32.gmra.mrb[26].mxu1 %v648_v53 }
 0x2d5   :  { %v649_v58 = vmul.f32 0.25, %v618_v13  ;;  %5495 = vmatpush3.bf16.msra.mxu1 %v6413_v38 }
 0x2d6   :  { %v6744_v29 = vadd.f32 %v650_v61, %v6680_v34  ;;  %5497 = vmatprep.subr.bf16.mxu1 %v6425_v43 }
 0x2d7   :  { %v6748_v63 = vadd.f32 %v649_v58, %v6684_v27  ;;  %v4359_v14 = vpop.f32.mrb[30].mxu0  ;;  %4410 = vmatprep.mubr.f32.mxu1 %v649_v58 }
 0x2d8   :  { %v652_v8 = vmul.f32 0.25, %v4359_v14  ;;  %v628_v26 = vpop.f32.mrb[31].mxu0  ;;  %4411 = vmatmul.mubr.f32.gmra.mrb[28].mxu1 %v650_v61 }
 0x2d9   :  { %v651_v62 = vmul.f32 0.25, %v628_v26  ;;  %5499 = vmatpush3.bf16.msra.mxu1 %v6425_v43 }
 0x2da   :  { %v6752_v35 = vadd.f32 %v652_v8, %v6688_v40  ;;  %5501 = vmatprep.subr.bf16.mxu1 %v6437_v46 }
 0x2db   :  { %v6756_v31 = vadd.f32 %v651_v62, %v6692_v37  ;;  %4413 = vmatprep.mubr.f32.mxu1 %v651_v62 }
 0x2dc   :  { %4414 = vmatmul.mubr.f32.gmra.mrb[30].mxu1 %v652_v8 }
 0x2dd   :  { %5503 = vmatpush3.bf16.msra.mxu1 %v6437_v46 }
 0x2de   :  { %5537 = vmatprep.subr.bf16.mxu1 %v6356_v16 }
 0x393   :  { %v4394_v34 = vpop.f32.mrb[16].mxu1 }
 0x394   :  { %v815_v27 = vmul.f32 0.2, %v4394_v34  ;;  %v735_v5 = vpop.f32.mrb[17].mxu1 }
 0x395   :  { %v814_v4 = vmul.f32 0.2, %v735_v5 }
 0x396   :  { %v6761_v32 = vadd.f32 %v815_v27, %v6697_v7 }
 0x397   :  { %v6764_v1 = vadd.f32 %v814_v4, %v6700_v42  ;;  %v4397_v40 = vpop.f32.mrb[18].mxu1  ;;  %4448 = vmatprep.mubr.f32.mxu0 %v814_v4 }
 0x398   :  { %v817_v37 = vmul.f32 0.2, %v4397_v40  ;;  %v745_v10 = vpop.f32.mrb[19].mxu1  ;;  %4449 = vmatmul.mubr.f32.vlgmr.msra.gmra.mrb[32].mxu0 %v815_v27 }
 0x399   :  { %v816_v2 = vmul.f32 0.2, %v745_v10  ;;  %5507 = vmatpush3.bf16.msra.mxu0 %v6356_v16 }
 0x39a   :  { %v6768_v39 = vadd.f32 %v817_v37, %v6704_v21  ;;  %5509 = vmatprep.subr.bf16.mxu0 %v6365_v19 }
 0x39b   :  { %v6772_v11 = vadd.f32 %v816_v2, %v6708_v49  ;;  %v4400_v7 = vpop.f32.mrb[20].mxu1  ;;  %4451 = vmatprep.mubr.f32.mxu0 %v816_v2 }
 0x39c   :  { %v819_v42 = vmul.f32 0.2, %v4400_v7  ;;  %v755_v48 = vpop.f32.mrb[21].mxu1  ;;  %4452 = vmatmul.mubr.f32.gmra.mrb[34].mxu0 %v817_v37 }
 0x39d   :  { %v818_v45 = vmul.f32 0.2, %v755_v48  ;;  %5511 = vmatpush3.bf16.msra.mxu0 %v6365_v19 }
 0x39e   :  { %v6776_v20 = vadd.f32 %v819_v42, %v6712_v51  ;;  %5513 = vmatprep.subr.bf16.mxu0 %v6377_v23 }
 0x39f   :  { %v6780_v44 = vadd.f32 %v818_v45, %v6716_v52  ;;  %v4403_v21 = vpop.f32.mrb[22].mxu1  ;;  %4454 = vmatprep.mubr.f32.mxu0 %v818_v45 }
 0x3a0   :  { %v821_v49 = vmul.f32 0.2, %v4403_v21  ;;  %v765_v47 = vpop.f32.mrb[23].mxu1  ;;  %4455 = vmatmul.mubr.f32.gmra.mrb[36].mxu0 %v819_v42 }
 0x3a1   :  { %v820_v15 = vmul.f32 0.2, %v765_v47  ;;  %5515 = vmatpush3.bf16.msra.mxu0 %v6377_v23 }
 0x3a2   :  { %v6784_v50 = vadd.f32 %v821_v49, %v6720_v17  ;;  %5517 = vmatprep.subr.bf16.mxu0 %v6389_v28 }
 0x3a3   :  { %v6788_v12 = vadd.f32 %v820_v15, %v6724_v55  ;;  %v4406_v51 = vpop.f32.mrb[24].mxu1  ;;  %4457 = vmatprep.mubr.f32.mxu0 %v820_v15 }
 0x3a4   :  { %v823_v52 = vmul.f32 0.2, %v4406_v51  ;;  %v775_v18 = vpop.f32.mrb[25].mxu1  ;;  %4458 = vmatmul.mubr.f32.gmra.mrb[38].mxu0 %v821_v49 }
 0x3a5   :  { %v822_v56 = vmul.f32 0.2, %v775_v18  ;;  %5519 = vmatpush3.bf16.msra.mxu0 %v6389_v28 }
 0x3a6   :  { %v6792_v36 = vadd.f32 %v823_v52, %v6728_v25  ;;  %5521 = vmatprep.subr.bf16.mxu0 %v6401_v33 }
 0x3a7   :  { %v6796_v41 = vadd.f32 %v822_v56, %v6732_v0  ;;  %v4409_v17 = vpop.f32.mrb[26].mxu1  ;;  %4460 = vmatprep.mubr.f32.mxu0 %v822_v56 }
 0x3a8   :  { %v825_v55 = vmul.f32 0.2, %v4409_v17  ;;  %v785_v57 = vpop.f32.mrb[27].mxu1  ;;  %4461 = vmatmul.mubr.f32.gmra.mrb[40].mxu0 %v823_v52 }
 0x3a9   :  { %v824_v9 = vmul.f32 0.2, %v785_v57  ;;  %5523 = vmatpush3.bf16.msra.mxu0 %v6401_v33 }
 0x3aa   :  { %v6800_v60 = vadd.f32 %v825_v55, %v6736_v3  ;;  %5525 = vmatprep.subr.bf16.mxu0 %v6413_v38 }
 0x3ab   :  { %v6804_v22 = vadd.f32 %v824_v9, %v6740_v6  ;;  %v4412_v25 = vpop.f32.mrb[28].mxu1  ;;  %4463 = vmatprep.mubr.f32.mxu0 %v824_v9 }
 0x3ac   :  { %v827_v0 = vmul.f32 0.2, %v4412_v25  ;;  %v795_v24 = vpop.f32.mrb[29].mxu1  ;;  %4464 = vmatmul.mubr.f32.gmra.mrb[42].mxu0 %v825_v55 }
 0x3ad   :  { %v826_v53 = vmul.f32 0.2, %v795_v24  ;;  %5527 = vmatpush3.bf16.msra.mxu0 %v6413_v38 }
 0x3ae   :  { %v6808_v59 = vadd.f32 %v827_v0, %v6744_v29  ;;  %5529 = vmatprep.subr.bf16.mxu0 %v6425_v43 }
 0x3af   :  { %v6812_v54 = vadd.f32 %v826_v53, %v6748_v63  ;;  %v4415_v3 = vpop.f32.mrb[30].mxu1  ;;  %4466 = vmatprep.mubr.f32.mxu0 %v826_v53 }
 0x3b0   :  { %v829_v6 = vmul.f32 0.2, %v4415_v3  ;;  %v805_v30 = vpop.f32.mrb[31].mxu1  ;;  %4467 = vmatmul.mubr.f32.gmra.mrb[44].mxu0 %v827_v0 }
 0x3b1   :  { %v828_v61 = vmul.f32 0.2, %v805_v30  ;;  %5531 = vmatpush3.bf16.msra.mxu0 %v6425_v43 }
 0x3b2   :  { %v6816_v13 = vadd.f32 %v829_v6, %v6752_v35  ;;  %5533 = vmatprep.subr.bf16.mxu0 %v6437_v46 }
 0x3b3   :  { %v6820_v58 = vadd.f32 %v828_v61, %v6756_v31  ;;  %4469 = vmatprep.mubr.f32.mxu0 %v828_v61 }
 0x3b4   :  { %4470 = vmatmul.mubr.f32.gmra.mrb[46].mxu0 %v829_v6 }
 0x3b5   :  { %5535 = vmatpush3.bf16.msra.mxu0 %v6437_v46 }
 0x3b6   :  { %5569 = vmatprep.subr.bf16.mxu0 %v6356_v16 }
 0x46b   :  { %v4450_v29 = vpop.f32.mrb[32].mxu0 }
 0x46c   :  { %v992_v63 = vmul.f32 0.16666667, %v4450_v29  ;;  %v912_v14 = vpop.f32.mrb[33].mxu0 }
 0x46d   :  { %v991_v8 = vmul.f32 0.16666667, %v912_v14 }
 0x46e   :  { %v6825_v26 = vadd.f32 %v992_v63, %v6761_v32 }
 0x46f   :  { %v6828_v62 = vadd.f32 %v991_v8, %v6764_v1  ;;  %v4453_v35 = vpop.f32.mrb[34].mxu0  ;;  %4504 = vmatprep.mubr.f32.mxu1 %v991_v8 }
 0x470   :  { %v994_v31 = vmul.f32 0.16666667, %v4453_v35  ;;  %v922_v34 = vpop.f32.mrb[35].mxu0  ;;  %4505 = vmatmul.mubr.f32.vlgmr.msra.gmra.mrb[32].mxu1 %v992_v63 }
 0x471   :  { %v993_v27 = vmul.f32 0.16666667, %v922_v34  ;;  %5539 = vmatpush3.bf16.msra.mxu1 %v6356_v16 }
 0x472   :  { %v6832_v5 = vadd.f32 %v994_v31, %v6768_v39  ;;  %5541 = vmatprep.subr.bf16.mxu1 %v6365_v19 }
 0x473   :  { %v6836_v4 = vadd.f32 %v993_v27, %v6772_v11  ;;  %v4456_v32 = vpop.f32.mrb[36].mxu0  ;;  %4507 = vmatprep.mubr.f32.mxu1 %v993_v27 }
 0x474   :  { %v996_v1 = vmul.f32 0.16666667, %v4456_v32  ;;  %v932_v40 = vpop.f32.mrb[37].mxu0  ;;  %4508 = vmatmul.mubr.f32.gmra.mrb[34].mxu1 %v994_v31 }
 0x475   :  { %v995_v37 = vmul.f32 0.16666667, %v932_v40  ;;  %5543 = vmatpush3.bf16.msra.mxu1 %v6365_v19 }
 0x476   :  { %v6840_v10 = vadd.f32 %v996_v1, %v6776_v20  ;;  %5545 = vmatprep.subr.bf16.mxu1 %v6377_v23 }
 0x477   :  { %v6844_v2 = vadd.f32 %v995_v37, %v6780_v44  ;;  %v4459_v39 = vpop.f32.mrb[38].mxu0  ;;  %4510 = vmatprep.mubr.f32.mxu1 %v995_v37 }
 0x478   :  { %v998_v11 = vmul.f32 0.16666667, %v4459_v39  ;;  %v942_v7 = vpop.f32.mrb[39].mxu0  ;;  %4511 = vmatmul.mubr.f32.gmra.mrb[36].mxu1 %v996_v1 }
 0x479   :  { %v997_v42 = vmul.f32 0.16666667, %v942_v7  ;;  %5547 = vmatpush3.bf16.msra.mxu1 %v6377_v23 }
 0x47a   :  { %v6848_v48 = vadd.f32 %v998_v11, %v6784_v50  ;;  %5549 = vmatprep.subr.bf16.mxu1 %v6389_v28 }
 0x47b   :  { %v6852_v45 = vadd.f32 %v997_v42, %v6788_v12  ;;  %v4462_v20 = vpop.f32.mrb[40].mxu0  ;;  %4513 = vmatprep.mubr.f32.mxu1 %v997_v42 }
 0x47c   :  { %v1000_v44 = vmul.f32 0.16666667, %v4462_v20  ;;  %v952_v21 = vpop.f32.mrb[41].mxu0  ;;  %4514 = vmatmul.mubr.f32.gmra.mrb[38].mxu1 %v998_v11 }
 0x47d   :  { %v999_v49 = vmul.f32 0.16666667, %v952_v21  ;;  %5551 = vmatpush3.bf16.msra.mxu1 %v6389_v28 }
 0x47e   :  { %v6856_v47 = vadd.f32 %v1000_v44, %v6792_v36  ;;  %5553 = vmatprep.subr.bf16.mxu1 %v6401_v33 }
 0x47f   :  { %v6860_v15 = vadd.f32 %v999_v49, %v6796_v41  ;;  %v4465_v50 = vpop.f32.mrb[42].mxu0  ;;  %4516 = vmatprep.mubr.f32.mxu1 %v999_v49 }
 0x480   :  { %v1002_v12 = vmul.f32 0.16666667, %v4465_v50  ;;  %v962_v51 = vpop.f32.mrb[43].mxu0  ;;  %4517 = vmatmul.mubr.f32.gmra.mrb[40].mxu1 %v1000_v44 }
 0x481   :  { %v1001_v52 = vmul.f32 0.16666667, %v962_v51  ;;  %5555 = vmatpush3.bf16.msra.mxu1 %v6401_v33 }
 0x482   :  { %v6864_v18 = vadd.f32 %v1002_v12, %v6800_v60  ;;  %5557 = vmatprep.subr.bf16.mxu1 %v6413_v38 }
 0x483   :  { %v6868_v56 = vadd.f32 %v1001_v52, %v6804_v22  ;;  %v4468_v36 = vpop.f32.mrb[44].mxu0  ;;  %4519 = vmatprep.mubr.f32.mxu1 %v1001_v52 }
 0x484   :  { %v1004_v41 = vmul.f32 0.16666667, %v4468_v36  ;;  %v972_v17 = vpop.f32.mrb[45].mxu0  ;;  %4520 = vmatmul.mubr.f32.gmra.mrb[42].mxu1 %v1002_v12 }
 0x485   :  { %v1003_v55 = vmul.f32 0.16666667, %v972_v17  ;;  %5559 = vmatpush3.bf16.msra.mxu1 %v6413_v38 }
 0x486   :  { %v6872_v57 = vadd.f32 %v1004_v41, %v6808_v59  ;;  %5561 = vmatprep.subr.bf16.mxu1 %v6425_v43 }
 0x487   :  { %v6876_v9 = vadd.f32 %v1003_v55, %v6812_v54  ;;  %v4471_v60 = vpop.f32.mrb[46].mxu0  ;;  %4522 = vmatprep.mubr.f32.mxu1 %v1003_v55 }
 0x488   :  { %v1006_v22 = vmul.f32 0.16666667, %v4471_v60  ;;  %v982_v25 = vpop.f32.mrb[47].mxu0  ;;  %4523 = vmatmul.mubr.f32.gmra.mrb[44].mxu1 %v1004_v41 }
 0x489   :  { %v1005_v0 = vmul.f32 0.16666667, %v982_v25  ;;  %5563 = vmatpush3.bf16.msra.mxu1 %v6425_v43 }
 0x48a   :  { %v6880_v24 = vadd.f32 %v1006_v22, %v6816_v13  ;;  %5565 = vmatprep.subr.bf16.mxu1 %v6437_v46 }
 0x48b   :  { %v6884_v53 = vadd.f32 %v1005_v0, %v6820_v58  ;;  %4525 = vmatprep.mubr.f32.mxu1 %v1005_v0 }
 0x48c   :  { %4526 = vmatmul.mubr.f32.gmra.mrb[46].mxu1 %v1006_v22 }
 0x48d   :  { %5567 = vmatpush3.bf16.msra.mxu1 %v6437_v46 }
 0x48e   :  { %5601 = vmatprep.subr.bf16.mxu1 %v6356_v16 }
 0x543   :  { %v4506_v59 = vpop.f32.mrb[32].mxu1 }
 0x544   :  { %v1169_v54 = vmul.f32 0.14285715, %v4506_v59  ;;  %v1089_v3 = vpop.f32.mrb[33].mxu1 }
 0x545   :  { %v1168_v6 = vmul.f32 0.14285715, %v1089_v3 }
 0x546   :  { %v6889_v30 = vadd.f32 %v1169_v54, %v6825_v26 }
 0x547   :  { %v6892_v61 = vadd.f32 %v1168_v6, %v6828_v62  ;;  %v4509_v13 = vpop.f32.mrb[34].mxu1  ;;  %4560 = vmatprep.mubr.f32.mxu0 %v1168_v6 }
 0x548   :  { %v1171_v58 = vmul.f32 0.14285715, %v4509_v13  ;;  %v1099_v29 = vpop.f32.mrb[35].mxu1  ;;  %4561 = vmatmul.mubr.f32.vlgmr.msra.gmra.mrb[48].mxu0 %v1169_v54 }
 0x549   :  { %v1170_v63 = vmul.f32 0.14285715, %v1099_v29  ;;  %5571 = vmatpush3.bf16.msra.mxu0 %v6356_v16 }
 0x54a   :  { %v6896_v14 = vadd.f32 %v1171_v58, %v6832_v5  ;;  %5573 = vmatprep.subr.bf16.mxu0 %v6365_v19 }
 0x54b   :  { %v6900_v8 = vadd.f32 %v1170_v63, %v6836_v4  ;;  %v4512_v26 = vpop.f32.mrb[36].mxu1  ;;  %4563 = vmatprep.mubr.f32.mxu0 %v1170_v63 }
 0x54c   :  { %v1173_v62 = vmul.f32 0.14285715, %v4512_v26  ;;  %v1109_v35 = vpop.f32.mrb[37].mxu1  ;;  %4564 = vmatmul.mubr.f32.gmra.mrb[50].mxu0 %v1171_v58 }
 0x54d   :  { %v1172_v31 = vmul.f32 0.14285715, %v1109_v35  ;;  %5575 = vmatpush3.bf16.msra.mxu0 %v6365_v19 }
 0x54e   :  { %v6904_v34 = vadd.f32 %v1173_v62, %v6840_v10  ;;  %5577 = vmatprep.subr.bf16.mxu0 %v6377_v23 }
 0x54f   :  { %v6908_v27 = vadd.f32 %v1172_v31, %v6844_v2  ;;  %v4515_v5 = vpop.f32.mrb[38].mxu1  ;;  %4566 = vmatprep.mubr.f32.mxu0 %v1172_v31 }
 0x550   :  { %v1175_v4 = vmul.f32 0.14285715, %v4515_v5  ;;  %v1119_v32 = vpop.f32.mrb[39].mxu1  ;;  %4567 = vmatmul.mubr.f32.gmra.mrb[52].mxu0 %v1173_v62 }
 0x551   :  { %v1174_v1 = vmul.f32 0.14285715, %v1119_v32  ;;  %5579 = vmatpush3.bf16.msra.mxu0 %v6377_v23 }
 0x552   :  { %v6912_v40 = vadd.f32 %v1175_v4, %v6848_v48  ;;  %5581 = vmatprep.subr.bf16.mxu0 %v6389_v28 }
 0x553   :  { %v6916_v37 = vadd.f32 %v1174_v1, %v6852_v45  ;;  %v4518_v10 = vpop.f32.mrb[40].mxu1  ;;  %4569 = vmatprep.mubr.f32.mxu0 %v1174_v1 }
 0x554   :  { %v1177_v2 = vmul.f32 0.14285715, %v4518_v10  ;;  %v1129_v39 = vpop.f32.mrb[41].mxu1  ;;  %4570 = vmatmul.mubr.f32.gmra.mrb[54].mxu0 %v1175_v4 }
 0x555   :  { %v1176_v11 = vmul.f32 0.14285715, %v1129_v39  ;;  %5583 = vmatpush3.bf16.msra.mxu0 %v6389_v28 }
 0x556   :  { %v6920_v7 = vadd.f32 %v1177_v2, %v6856_v47  ;;  %5585 = vmatprep.subr.bf16.mxu0 %v6401_v33 }
 0x557   :  { %v6924_v42 = vadd.f32 %v1176_v11, %v6860_v15  ;;  %v4521_v48 = vpop.f32.mrb[42].mxu1  ;;  %4572 = vmatprep.mubr.f32.mxu0 %v1176_v11 }
 0x558   :  { %v1179_v45 = vmul.f32 0.14285715, %v4521_v48  ;;  %v1139_v20 = vpop.f32.mrb[43].mxu1  ;;  %4573 = vmatmul.mubr.f32.gmra.mrb[56].mxu0 %v1177_v2 }
 0x559   :  { %v1178_v44 = vmul.f32 0.14285715, %v1139_v20  ;;  %5587 = vmatpush3.bf16.msra.mxu0 %v6401_v33 }
 0x55a   :  { %v6928_v21 = vadd.f32 %v1179_v45, %v6864_v18  ;;  %5589 = vmatprep.subr.bf16.mxu0 %v6413_v38 }
 0x55b   :  { %v6932_v49 = vadd.f32 %v1178_v44, %v6868_v56  ;;  %v4524_v47 = vpop.f32.mrb[44].mxu1  ;;  %4575 = vmatprep.mubr.f32.mxu0 %v1178_v44 }
 0x55c   :  { %v1181_v15 = vmul.f32 0.14285715, %v4524_v47  ;;  %v1149_v50 = vpop.f32.mrb[45].mxu1  ;;  %4576 = vmatmul.mubr.f32.gmra.mrb[58].mxu0 %v1179_v45 }
 0x55d   :  { %v1180_v12 = vmul.f32 0.14285715, %v1149_v50  ;;  %5591 = vmatpush3.bf16.msra.mxu0 %v6413_v38 }
 0x55e   :  { %v6936_v51 = vadd.f32 %v1181_v15, %v6872_v57  ;;  %5593 = vmatprep.subr.bf16.mxu0 %v6425_v43 }
 0x55f   :  { %v6940_v52 = vadd.f32 %v1180_v12, %v6876_v9  ;;  %v4527_v18 = vpop.f32.mrb[46].mxu1  ;;  %4578 = vmatprep.mubr.f32.mxu0 %v1180_v12 }
 0x560   :  { %v1183_v56 = vmul.f32 0.14285715, %v4527_v18  ;;  %v1159_v36 = vpop.f32.mrb[47].mxu1  ;;  %4579 = vmatmul.mubr.f32.gmra.mrb[60].mxu0 %v1181_v15 }
 0x561   :  { %v1182_v41 = vmul.f32 0.14285715, %v1159_v36  ;;  %5595 = vmatpush3.bf16.msra.mxu0 %v6425_v43 }
 0x562   :  { %v6944_v17 = vadd.f32 %v1183_v56, %v6880_v24  ;;  %5597 = vmatprep.subr.bf16.mxu0 %v6437_v46 }
 0x563   :  { %v6948_v55 = vadd.f32 %v1182_v41, %v6884_v53  ;;  %4581 = vmatprep.mubr.f32.mxu0 %v1182_v41 }
 0x564   :  { %4582 = vmatmul.mubr.f32.gmra.mrb[62].mxu0 %v1183_v56 }
 0x565   :  { %5599 = vmatpush3.bf16.msra.mxu0 %v6437_v46 }
 0x566   :  { %5633 = vmatprep.subr.bf16.mxu0 %v6356_v16 }
 0x61b   :  { %v4562_v57 = vpop.f32.mrb[48].mxu0 }
 0x61c   :  { %v1346_v9 = vmul.f32 0.125, %v4562_v57  ;;  %v1266_v60 = vpop.f32.mrb[49].mxu0 }
 0x61d   :  { %v1345_v22 = vmul.f32 0.125, %v1266_v60 }
 0x61e   :  { %v6953_v25 = vadd.f32 %v1346_v9, %v6889_v30 }
 0x61f   :  { %v6956_v0 = vadd.f32 %v1345_v22, %v6892_v61  ;;  %v4565_v24 = vpop.f32.mrb[50].mxu0  ;;  %4616 = vmatprep.mubr.f32.mxu1 %v1345_v22 }
 0x620   :  { %v1348_v53 = vmul.f32 0.125, %v4565_v24  ;;  %v1276_v59 = vpop.f32.mrb[51].mxu0  ;;  %4617 = vmatmul.mubr.f32.vlgmr.msra.gmra.mrb[48].mxu1 %v1346_v9 }
 0x621   :  { %v1347_v54 = vmul.f32 0.125, %v1276_v59  ;;  %5603 = vmatpush3.bf16.msra.mxu1 %v6356_v16 }
 0x622   :  { %v6960_v3 = vadd.f32 %v1348_v53, %v6896_v14  ;;  %5605 = vmatprep.subr.bf16.mxu1 %v6365_v19 }
 0x623   :  { %v6964_v6 = vadd.f32 %v1347_v54, %v6900_v8  ;;  %v4568_v30 = vpop.f32.mrb[52].mxu0  ;;  %4619 = vmatprep.mubr.f32.mxu1 %v1347_v54 }
 0x624   :  { %v1350_v61 = vmul.f32 0.125, %v4568_v30  ;;  %v1286_v13 = vpop.f32.mrb[53].mxu0  ;;  %4620 = vmatmul.mubr.f32.gmra.mrb[50].mxu1 %v1348_v53 }
 0x625   :  { %v1349_v58 = vmul.f32 0.125, %v1286_v13  ;;  %5607 = vmatpush3.bf16.msra.mxu1 %v6365_v19 }
 0x626   :  { %v6968_v29 = vadd.f32 %v1350_v61, %v6904_v34  ;;  %5609 = vmatprep.subr.bf16.mxu1 %v6377_v23 }
 0x627   :  { %v6972_v63 = vadd.f32 %v1349_v58, %v6908_v27  ;;  %v4571_v14 = vpop.f32.mrb[54].mxu0  ;;  %4622 = vmatprep.mubr.f32.mxu1 %v1349_v58 }
 0x628   :  { %v1352_v8 = vmul.f32 0.125, %v4571_v14  ;;  %v1296_v26 = vpop.f32.mrb[55].mxu0  ;;  %4623 = vmatmul.mubr.f32.gmra.mrb[52].mxu1 %v1350_v61 }
 0x629   :  { %v1351_v62 = vmul.f32 0.125, %v1296_v26  ;;  %5611 = vmatpush3.bf16.msra.mxu1 %v6377_v23 }
 0x62a   :  { %v6976_v35 = vadd.f32 %v1352_v8, %v6912_v40  ;;  %5613 = vmatprep.subr.bf16.mxu1 %v6389_v28 }
 0x62b   :  { %v6980_v31 = vadd.f32 %v1351_v62, %v6916_v37  ;;  %v4574_v34 = vpop.f32.mrb[56].mxu0  ;;  %4625 = vmatprep.mubr.f32.mxu1 %v1351_v62 }
 0x62c   :  { %v1354_v27 = vmul.f32 0.125, %v4574_v34  ;;  %v1306_v5 = vpop.f32.mrb[57].mxu0  ;;  %4626 = vmatmul.mubr.f32.gmra.mrb[54].mxu1 %v1352_v8 }
 0x62d   :  { %v1353_v4 = vmul.f32 0.125, %v1306_v5  ;;  %5615 = vmatpush3.bf16.msra.mxu1 %v6389_v28 }
 0x62e   :  { %v6984_v32 = vadd.f32 %v1354_v27, %v6920_v7  ;;  %5617 = vmatprep.subr.bf16.mxu1 %v6401_v33 }
 0x62f   :  { %v6988_v1 = vadd.f32 %v1353_v4, %v6924_v42  ;;  %v4577_v40 = vpop.f32.mrb[58].mxu0  ;;  %4628 = vmatprep.mubr.f32.mxu1 %v1353_v4 }
 0x630   :  { %v1356_v37 = vmul.f32 0.125, %v4577_v40  ;;  %v1316_v10 = vpop.f32.mrb[59].mxu0  ;;  %4629 = vmatmul.mubr.f32.gmra.mrb[56].mxu1 %v1354_v27 }
 0x631   :  { %v1355_v2 = vmul.f32 0.125, %v1316_v10  ;;  %5619 = vmatpush3.bf16.msra.mxu1 %v6401_v33 }
 0x632   :  { %v6992_v39 = vadd.f32 %v1356_v37, %v6928_v21  ;;  %5621 = vmatprep.subr.bf16.mxu1 %v6413_v38 }
 0x633   :  { %v6996_v11 = vadd.f32 %v1355_v2, %v6932_v49  ;;  %v4580_v7 = vpop.f32.mrb[60].mxu0  ;;  %4631 = vmatprep.mubr.f32.mxu1 %v1355_v2 }
 0x634   :  { %v1358_v42 = vmul.f32 0.125, %v4580_v7  ;;  %v1326_v48 = vpop.f32.mrb[61].mxu0  ;;  %4632 = vmatmul.mubr.f32.gmra.mrb[58].mxu1 %v1356_v37 }
 0x635   :  { %v1357_v45 = vmul.f32 0.125, %v1326_v48  ;;  %5623 = vmatpush3.bf16.msra.mxu1 %v6413_v38 }
 0x636   :  { %v7000_v20 = vadd.f32 %v1358_v42, %v6936_v51  ;;  %5625 = vmatprep.subr.bf16.mxu1 %v6425_v43 }
 0x637   :  { %v7004_v44 = vadd.f32 %v1357_v45, %v6940_v52  ;;  %v4583_v21 = vpop.f32.mrb[62].mxu0  ;;  %4634 = vmatprep.mubr.f32.mxu1 %v1357_v45 }
 0x638   :  { %v1360_v49 = vmul.f32 0.125, %v4583_v21  ;;  %v1336_v47 = vpop.f32.mrb[63].mxu0  ;;  %4635 = vmatmul.mubr.f32.gmra.mrb[60].mxu1 %v1358_v42 }
 0x639   :  { %v1359_v15 = vmul.f32 0.125, %v1336_v47  ;;  %5627 = vmatpush3.bf16.msra.mxu1 %v6425_v43 }
 0x63a   :  { %v7008_v50 = vadd.f32 %v1360_v49, %v6944_v17  ;;  %5629 = vmatprep.subr.bf16.mxu1 %v6437_v46 }
 0x63b   :  { %v7012_v12 = vadd.f32 %v1359_v15, %v6948_v55  ;;  %4637 = vmatprep.mubr.f32.mxu1 %v1359_v15 }
 0x63c   :  { %4638 = vmatmul.mubr.f32.gmra.mrb[62].mxu1 %v1360_v49 }
 0x63d   :  { %5631 = vmatpush3.bf16.msra.mxu1 %v6437_v46 }
 0x6f3   :  { %v4618_v51 = vpop.f32.mrb[48].mxu1 }
 0x6f4   :  { %v1523_v52 = vmul.f32 0.11111111, %v4618_v51  ;;  %v1443_v18 = vpop.f32.mrb[49].mxu1 }
 0x6f5   :  { %v1522_v56 = vmul.f32 0.11111111, %v1443_v18 }
 0x6f6   :  { %v7016_v36 = vadd.f32 %v1523_v52, %v6953_v25 }
 0x6f7   :  { %v7019_v41 = vadd.f32 %v1522_v56, %v6956_v0  ;;  %v4621_v17 = vpop.f32.mrb[50].mxu1  ;;  %4672 = vmatprep.mubr.f32.mxu0 %v1522_v56 }
 0x6f8   :  { %v1525_v57 = vmul.f32 0.11111111, %v4621_v17  ;;  %v1453_v9 = vpop.f32.mrb[51].mxu1  ;;  %4673 = vmatmul.mubr.f32.vlgmr.msra.gmra.mrb[64].mxu0 %v1523_v52 }
 0x6f9   :  { %v1524_v55 = vmul.f32 0.11111111, %v1453_v9  ;;  %5635 = vmatpush3.bf16.msra.mxu0 %v6356_v16 }
 0x6fa   :  { %v7023_v60 = vadd.f32 %v1525_v57, %v6960_v3  ;;  %5637 = vmatprep.subr.bf16.mxu0 %v6365_v19 }
 0x6fb   :  { %v7027_v22 = vadd.f32 %v1524_v55, %v6964_v6  ;;  %v4624_v25 = vpop.f32.mrb[52].mxu1  ;;  %4675 = vmatprep.mubr.f32.mxu0 %v1524_v55 }
 0x6fc   :  { %v1527_v0 = vmul.f32 0.11111111, %v4624_v25  ;;  %v1463_v24 = vpop.f32.mrb[53].mxu1  ;;  %4676 = vmatmul.mubr.f32.gmra.mrb[66].mxu0 %v1525_v57 }
 0x6fd   :  { %v1526_v53 = vmul.f32 0.11111111, %v1463_v24  ;;  %5639 = vmatpush3.bf16.msra.mxu0 %v6365_v19 }
 0x6fe   :  { %v7031_v59 = vadd.f32 %v1527_v0, %v6968_v29  ;;  %5641 = vmatprep.subr.bf16.mxu0 %v6377_v23 }
 0x6ff   :  { %v7035_v16 = vadd.f32 %v1526_v53, %v6972_v63  ;;  %v4627_v54 = vpop.f32.mrb[54].mxu1  ;;  %4678 = vmatprep.mubr.f32.mxu0 %v1526_v53 }
 0x700   :  { %v1529_v3 = vmul.f32 0.11111111, %v4627_v54  ;;  %v1473_v6 = vpop.f32.mrb[55].mxu1  ;;  %4679 = vmatmul.mubr.f32.gmra.mrb[68].mxu0 %v1527_v0 }
 0x701   :  { %v1528_v30 = vmul.f32 0.11111111, %v1473_v6  ;;  %5643 = vmatpush3.bf16.msra.mxu0 %v6377_v23 }
 0x702   :  { %v7039_v61 = vadd.f32 %v1529_v3, %v6976_v35  ;;  %5645 = vmatprep.subr.bf16.mxu0 %v6389_v28 }
 0x703   :  { %v7043_v19 = vadd.f32 %v1528_v30, %v6980_v31  ;;  %v4630_v13 = vpop.f32.mrb[56].mxu1  ;;  %4681 = vmatprep.mubr.f32.mxu0 %v1528_v30 }
 0x704   :  { %v1531_v58 = vmul.f32 0.11111111, %v4630_v13  ;;  %v1483_v29 = vpop.f32.mrb[57].mxu1  ;;  %4682 = vmatmul.mubr.f32.gmra.mrb[70].mxu0 %v1529_v3 }
 0x705   :  { %v1530_v63 = vmul.f32 0.11111111, %v1483_v29  ;;  %5647 = vmatpush3.bf16.msra.mxu0 %v6389_v28 }
 0x706   :  { %v7047_v14 = vadd.f32 %v1531_v58, %v6984_v32  ;;  %5649 = vmatprep.subr.bf16.mxu0 %v6401_v33 }
 0x707   :  { %v7051_v23 = vadd.f32 %v1530_v63, %v6988_v1  ;;  %v4633_v8 = vpop.f32.mrb[58].mxu1  ;;  %4684 = vmatprep.mubr.f32.mxu0 %v1530_v63 }
 0x708   :  { %v1533_v26 = vmul.f32 0.11111111, %v4633_v8  ;;  %v1493_v62 = vpop.f32.mrb[59].mxu1  ;;  %4685 = vmatmul.mubr.f32.gmra.mrb[72].mxu0 %v1531_v58 }
 0x709   :  { %v1532_v35 = vmul.f32 0.11111111, %v1493_v62  ;;  %5651 = vmatpush3.bf16.msra.mxu0 %v6401_v33 }
 0x70a   :  { %v7055_v31 = vadd.f32 %v1533_v26, %v6992_v39  ;;  %5653 = vmatprep.subr.bf16.mxu0 %v6413_v38 }
 0x70b   :  { %v7059_v28 = vadd.f32 %v1532_v35, %v6996_v11  ;;  %v4636_v34 = vpop.f32.mrb[60].mxu1  ;;  %4687 = vmatprep.mubr.f32.mxu0 %v1532_v35 }
 0x70c   :  { %v1535_v27 = vmul.f32 0.11111111, %v4636_v34  ;;  %v1503_v5 = vpop.f32.mrb[61].mxu1  ;;  %4688 = vmatmul.mubr.f32.gmra.mrb[74].mxu0 %v1533_v26 }
 0x70d   :  { %v1534_v4 = vmul.f32 0.11111111, %v1503_v5  ;;  %5655 = vmatpush3.bf16.msra.mxu0 %v6413_v38 }
 0x70e   :  { %v7063_v32 = vadd.f32 %v1535_v27, %v7000_v20  ;;  %5657 = vmatprep.subr.bf16.mxu0 %v6425_v43 }
 0x70f   :  { %v7067_v33 = vadd.f32 %v1534_v4, %v7004_v44  ;;  %v4639_v1 = vpop.f32.mrb[62].mxu1  ;;  %4690 = vmatprep.mubr.f32.mxu0 %v1534_v4 }
 0x710   :  { %v1537_v40 = vmul.f32 0.11111111, %v4639_v1  ;;  %v1513_v37 = vpop.f32.mrb[63].mxu1  ;;  %4691 = vmatmul.mubr.f32.gmra.mrb[76].mxu0 %v1535_v27 }
 0x711   :  { %v1536_v10 = vmul.f32 0.11111111, %v1513_v37  ;;  %5659 = vmatpush3.bf16.msra.mxu0 %v6425_v43 }
 0x712   :  { %v7071_v2 = vadd.f32 %v1537_v40, %v7008_v50  ;;  %5661 = vmatprep.subr.bf16.mxu0 %v6437_v46 }
 0x713   :  { %v7075_v38 = vadd.f32 %v1536_v10, %v7012_v12  ;;  %4693 = vmatprep.mubr.f32.mxu0 %v1536_v10 }
 0x714   :  { %4694 = vmatmul.mubr.f32.gmra.mrb[78].mxu0 %v1537_v40 }
 0x715   :  { %5663 = vmatpush3.bf16.msra.mxu0 %v6437_v46 }
 0x7cb   :  { %v4674_v39 = vpop.f32.mrb[64].mxu0 }
 0x7cc   :  { %v1700_v11 = vmul.f32 0.1, %v4674_v39  ;;  %v1620_v7 = vpop.f32.mrb[65].mxu0 }
 0x7cd   :  { %v1699_v42 = vmul.f32 0.1, %v1620_v7 }
 0x7ce   :  { %v7079_v48 = vadd.f32 %v1700_v11, %v7016_v36 }
 0x7cf   :  { %v7082_v43 = vadd.f32 %v1699_v42, %v7019_v41  ;;  %v4677_v45 = vpop.f32.mrb[66].mxu0  ;;  %4728 = vmatprep.mubr.f32.mxu1 %v1699_v42 }
 0x7d0   :  { %v1702_v20 = vmul.f32 0.1, %v4677_v45  ;;  %v1630_v44 = vpop.f32.mrb[67].mxu0  ;;  %4729 = vmatmul.mubr.f32.vlgmr.msra.gmra.mrb[64].mxu1 %v1700_v11 }
 0x7d1   :  { %v1701_v21 = vmul.f32 0.1, %v1630_v44 }
 0x7d2   :  { %v7085_v49 = vadd.f32 %v1702_v20, %v7023_v60 }
 0x7d3   :  { %v7088_v46 = vadd.f32 %v1701_v21, %v7027_v22  ;;  %v4680_v47 = vpop.f32.mrb[68].mxu0  ;;  %4731 = vmatprep.mubr.f32.mxu1 %v1701_v21 }
 0x7d4   :  { %v1704_v15 = vmul.f32 0.1, %v4680_v47  ;;  %v1640_v50 = vpop.f32.mrb[69].mxu0  ;;  %4732 = vmatmul.mubr.f32.gmra.mrb[66].mxu1 %v1702_v20 }
 0x7d5   :  { %v1703_v12 = vmul.f32 0.1, %v1640_v50 }
 0x7d6   :  { %v7091_v51 = vadd.f32 %v1704_v15, %v7031_v59 }
 0x7d7   :  { %v7094_v52 = vadd.f32 %v1703_v12, %v7035_v16  ;;  %v4683_v18 = vpop.f32.mrb[70].mxu0  ;;  %4734 = vmatprep.mubr.f32.mxu1 %v1703_v12 }
 0x7d8   :  { %v1706_v56 = vmul.f32 0.1, %v4683_v18  ;;  %v1650_v36 = vpop.f32.mrb[71].mxu0  ;;  %4735 = vmatmul.mubr.f32.gmra.mrb[68].mxu1 %v1704_v15 }
 0x7d9   :  { %v1705_v41 = vmul.f32 0.1, %v1650_v36 }
 0x7da   :  { %v7097_v17 = vadd.f32 %v1706_v56, %v7039_v61 }
 0x7db   :  { %v7100_v57 = vadd.f32 %v1705_v41, %v7043_v19  ;;  %v4686_v9 = vpop.f32.mrb[72].mxu0  ;;  %4737 = vmatprep.mubr.f32.mxu1 %v1705_v41 }
 0x7dc   :  { %v1708_v55 = vmul.f32 0.1, %v4686_v9  ;;  %v1660_v60 = vpop.f32.mrb[73].mxu0  ;;  %4738 = vmatmul.mubr.f32.gmra.mrb[70].mxu1 %v1706_v56 }
 0x7dd   :  { %v1707_v22 = vmul.f32 0.1, %v1660_v60 }
 0x7de   :  { %v7103_v25 = vadd.f32 %v1708_v55, %v7047_v14 }
 0x7df   :  { %v7106_v0 = vadd.f32 %v1707_v22, %v7051_v23  ;;  %v4689_v24 = vpop.f32.mrb[74].mxu0  ;;  %4740 = vmatprep.mubr.f32.mxu1 %v1707_v22 }
 0x7e0   :  { %v1710_v53 = vmul.f32 0.1, %v4689_v24  ;;  %v1670_v59 = vpop.f32.mrb[75].mxu0  ;;  %4741 = vmatmul.mubr.f32.gmra.mrb[72].mxu1 %v1708_v55 }
 0x7e1   :  { %v1709_v16 = vmul.f32 0.1, %v1670_v59 }
 0x7e2   :  { %v7109_v54 = vadd.f32 %v1710_v53, %v7055_v31 }
 0x7e3   :  { %v7112_v3 = vadd.f32 %v1709_v16, %v7059_v28  ;;  %v4692_v6 = vpop.f32.mrb[76].mxu0  ;;  %4743 = vmatprep.mubr.f32.mxu1 %v1709_v16 }
 0x7e4   :  { %v1712_v30 = vmul.f32 0.1, %v4692_v6  ;;  %v1680_v61 = vpop.f32.mrb[77].mxu0  ;;  %4744 = vmatmul.mubr.f32.gmra.mrb[74].mxu1 %v1710_v53 }
 0x7e5   :  { %v1711_v19 = vmul.f32 0.1, %v1680_v61 }
 0x7e6   :  { %v7115_v13 = vadd.f32 %v1712_v30, %v7063_v32 }
 0x7e7   :  { %v7118_v58 = vadd.f32 %v1711_v19, %v7067_v33  ;;  %v4695_v29 = vpop.f32.mrb[78].mxu0  ;;  %4746 = vmatprep.mubr.f32.mxu1 %v1711_v19 }
 0x7e8   :  { %v1714_v63 = vmul.f32 0.1, %v4695_v29  ;;  %v1690_v14 = vpop.f32.mrb[79].mxu0  ;;  %4747 = vmatmul.mubr.f32.gmra.mrb[76].mxu1 %v1712_v30 }
 0x7e9   :  { %v1713_v23 = vmul.f32 0.1, %v1690_v14 }
 0x7ea   :  { %v7121_v8 = vadd.f32 %v1714_v63, %v7071_v2 }
 0x7eb   :  { %v7124_v26 = vadd.f32 %v1713_v23, %v7075_v38  ;;  %4749 = vmatprep.mubr.f32.mxu1 %v1713_v23 }
 0x7ec   :  { %4750 = vmatmul.mubr.f32.gmra.mrb[78].mxu1 %v1714_v63 }
 0x8a3   :  { %v4730_v62 = vpop.f32.mrb[64].mxu1 }
 0x8a4   :  { %v1877_v35 = vmul.f32 0.09090909, %v4730_v62  ;;  %v1797_v31 = vpop.f32.mrb[65].mxu1 }
 0x8a5   :  { %v1876_v28 = vmul.f32 0.09090909, %v1797_v31 }
 0x8a6   :  { %v7127_v34 = vadd.f32 %v1877_v35, %v7079_v48 }
 0x8a7   :  { %v7130_v27 = vadd.f32 %v1876_v28, %v7082_v43  ;;  %v4733_v5 = vpop.f32.mrb[66].mxu1  ;;  %4784 = vmatprep.mubr.f32.mxu0 %v1876_v28 }
 0x8a8   :  { %v1879_v4 = vmul.f32 0.09090909, %v4733_v5  ;;  %v1807_v32 = vpop.f32.mrb[67].mxu1  ;;  %4785 = vmatmul.mubr.f32.vlgmr.msra.gmra.mrb[80].mxu0 %v1877_v35 }
 0x8a9   :  { %v1878_v33 = vmul.f32 0.09090909, %v1807_v32 }
 0x8aa   :  { %v7133_v1 = vadd.f32 %v1879_v4, %v7085_v49 }
 0x8ab   :  { %v7136_v40 = vadd.f32 %v1878_v33, %v7088_v46  ;;  %v4736_v37 = vpop.f32.mrb[68].mxu1  ;;  %4787 = vmatprep.mubr.f32.mxu0 %v1878_v33 }
 0x8ac   :  { %v1881_v10 = vmul.f32 0.09090909, %v4736_v37  ;;  %v1817_v2 = vpop.f32.mrb[69].mxu1  ;;  %4788 = vmatmul.mubr.f32.gmra.mrb[82].mxu0 %v1879_v4 }
 0x8ad   :  { %v1880_v38 = vmul.f32 0.09090909, %v1817_v2 }
 0x8ae   :  { %v7139_v39 = vadd.f32 %v1881_v10, %v7091_v51 }
 0x8af   :  { %v7142_v11 = vadd.f32 %v1880_v38, %v7094_v52  ;;  %v4739_v7 = vpop.f32.mrb[70].mxu1  ;;  %4790 = vmatprep.mubr.f32.mxu0 %v1880_v38 }
 0x8b0   :  { %v1883_v42 = vmul.f32 0.09090909, %v4739_v7  ;;  %v1827_v48 = vpop.f32.mrb[71].mxu1  ;;  %4791 = vmatmul.mubr.f32.gmra.mrb[84].mxu0 %v1881_v10 }
 0x8b1   :  { %v1882_v43 = vmul.f32 0.09090909, %v1827_v48 }
 0x8b2   :  { %v7145_v45 = vadd.f32 %v1883_v42, %v7097_v17 }
 0x8b3   :  { %v7148_v20 = vadd.f32 %v1882_v43, %v7100_v57  ;;  %v4742_v44 = vpop.f32.mrb[72].mxu1  ;;  %4793 = vmatprep.mubr.f32.mxu0 %v1882_v43 }
 0x8b4   :  { %v1885_v21 = vmul.f32 0.09090909, %v4742_v44  ;;  %v1837_v49 = vpop.f32.mrb[73].mxu1  ;;  %4794 = vmatmul.mubr.f32.gmra.mrb[86].mxu0 %v1883_v42 }
 0x8b5   :  { %v1884_v46 = vmul.f32 0.09090909, %v1837_v49 }
 0x8b6   :  { %v7151_v47 = vadd.f32 %v1885_v21, %v7103_v25 }
 0x8b7   :  { %v7154_v15 = vadd.f32 %v1884_v46, %v7106_v0  ;;  %v4745_v50 = vpop.f32.mrb[74].mxu1  ;;  %4796 = vmatprep.mubr.f32.mxu0 %v1884_v46 }
 0x8b8   :  { %v1887_v12 = vmul.f32 0.09090909, %v4745_v50  ;;  %v1847_v51 = vpop.f32.mrb[75].mxu1  ;;  %4797 = vmatmul.mubr.f32.gmra.mrb[88].mxu0 %v1885_v21 }
 0x8b9   :  { %v1886_v52 = vmul.f32 0.09090909, %v1847_v51 }
 0x8ba   :  { %v7157_v18 = vadd.f32 %v1887_v12, %v7109_v54 }
 0x8bb   :  { %v7160_v56 = vadd.f32 %v1886_v52, %v7112_v3  ;;  %v4748_v36 = vpop.f32.mrb[76].mxu1  ;;  %4799 = vmatprep.mubr.f32.mxu0 %v1886_v52 }
 0x8bc   :  { %v1889_v41 = vmul.f32 0.09090909, %v4748_v36  ;;  %v1857_v17 = vpop.f32.mrb[77].mxu1  ;;  %4800 = vmatmul.mubr.f32.gmra.mrb[90].mxu0 %v1887_v12 }
 0x8bd   :  { %v1888_v57 = vmul.f32 0.09090909, %v1857_v17 }
 0x8be   :  { %v7163_v9 = vadd.f32 %v1889_v41, %v7115_v13 }
 0x8bf   :  { %v7166_v55 = vadd.f32 %v1888_v57, %v7118_v58  ;;  %v4751_v60 = vpop.f32.mrb[78].mxu1  ;;  %4802 = vmatprep.mubr.f32.mxu0 %v1888_v57 }
 0x8c0   :  { %v1891_v22 = vmul.f32 0.09090909, %v4751_v60  ;;  %v1867_v25 = vpop.f32.mrb[79].mxu1  ;;  %4803 = vmatmul.mubr.f32.gmra.mrb[92].mxu0 %v1889_v41 }
 0x8c1   :  { %v1890_v0 = vmul.f32 0.09090909, %v1867_v25 }
 0x8c2   :  { %v7169_v24 = vadd.f32 %v1891_v22, %v7121_v8 }
 0x8c3   :  { %v7172_v53 = vadd.f32 %v1890_v0, %v7124_v26  ;;  %4805 = vmatprep.mubr.f32.mxu0 %v1890_v0 }
 0x8c4   :  { %4806 = vmatmul.mubr.f32.gmra.mrb[94].mxu0 %v1891_v22 }
 0x97b   :  { %v4786_v59 = vpop.f32.mrb[80].mxu0 }
 0x97c   :  { %v2054_v16 = vmul.f32 0.083333336, %v4786_v59  ;;  %v1974_v54 = vpop.f32.mrb[81].mxu0 }
 0x97d   :  { %v2053_v3 = vmul.f32 0.083333336, %v1974_v54 }
 0x97e   :  { %v7175_v6 = vadd.f32 %v2054_v16, %v7127_v34 }
 0x97f   :  { %v2069_v30 = vadd.f32 %v2053_v3, %v7130_v27  ;;  %v4789_v61 = vpop.f32.mrb[82].mxu0 }
 0x980   :  { %v2056_v19 = vmul.f32 0.083333336, %v4789_v61  ;;  %v1984_v13 = vpop.f32.mrb[83].mxu0 }
 0x981   :  { %v2055_v58 = vmul.f32 0.083333336, %v1984_v13  ;;  %4840 = vmatprep.mubr.f32.mxu1 %v2069_v30  ;;  %v5664_v29 = vpack.c.bf16 %v7175_v6, %v2069_v30 }
 0x982   :  { %v2072_v63 = vadd.f32 %v2056_v19, %v7133_v1 }
 0x983   :  { %v2071_v14 = vadd.f32 %v2055_v58, %v7136_v40  ;;  %v4792_v23 = vpop.f32.mrb[84].mxu0  ;;  %5665 = vmatprep.subr.bf16.mxu1 %v5664_v29 }
 0x984   :  { %v2058_v8 = vmul.f32 0.083333336, %v4792_v23  ;;  %v1994_v26 = vpop.f32.mrb[85].mxu0  ;;  %5667 = vmatpush3.bf16.msra.mxu1 %v5664_v29 }
 0x985   :  { %v2057_v62 = vmul.f32 0.083333336, %v1994_v26  ;;  %v5668_v35 = vpack.c.bf16 %v2072_v63, %v2071_v14 }
 0x986   :  { %v2074_v31 = vadd.f32 %v2058_v8, %v7139_v39 }
 0x987   :  { %v2073_v28 = vadd.f32 %v2057_v62, %v7142_v11  ;;  %v4795_v34 = vpop.f32.mrb[86].mxu0  ;;  %5669 = vmatprep.subr.bf16.mxu1 %v5668_v35 }
 0x988   :  { %v2060_v27 = vmul.f32 0.083333336, %v4795_v34  ;;  %v2004_v5 = vpop.f32.mrb[87].mxu0  ;;  %5671 = vmatpush3.bf16.msra.mxu1 %v5668_v35 }
 0x989   :  { %v2059_v4 = vmul.f32 0.083333336, %v2004_v5  ;;  %v5672_v32 = vpack.c.bf16 %v2074_v31, %v2073_v28 }
 0x98a   :  { %v2076_v33 = vadd.f32 %v2060_v27, %v7145_v45 }
 0x98b   :  { %v2075_v1 = vadd.f32 %v2059_v4, %v7148_v20  ;;  %v4798_v40 = vpop.f32.mrb[88].mxu0  ;;  %5673 = vmatprep.subr.bf16.mxu1 %v5672_v32 }
 0x98c   :  { %v2062_v37 = vmul.f32 0.083333336, %v4798_v40  ;;  %v2014_v10 = vpop.f32.mrb[89].mxu0  ;;  %5675 = vmatpush3.bf16.msra.mxu1 %v5672_v32 }
 0x98d   :  { %v2061_v2 = vmul.f32 0.083333336, %v2014_v10  ;;  %v5676_v38 = vpack.c.bf16 %v2076_v33, %v2075_v1 }
 0x98e   :  { %v2078_v39 = vadd.f32 %v2062_v37, %v7151_v47 }
 0x98f   :  { %v2077_v11 = vadd.f32 %v2061_v2, %v7154_v15  ;;  %v4801_v7 = vpop.f32.mrb[90].mxu0  ;;  %5677 = vmatprep.subr.bf16.mxu1 %v5676_v38 }
 0x990   :  { %v2064_v42 = vmul.f32 0.083333336, %v4801_v7  ;;  %v2024_v48 = vpop.f32.mrb[91].mxu0  ;;  %5679 = vmatpush3.bf16.msra.mxu1 %v5676_v38 }
 0x991   :  { %v2063_v43 = vmul.f32 0.083333336, %v2024_v48  ;;  %v5680_v45 = vpack.c.bf16 %v2078_v39, %v2077_v11 }
 0x992   :  { %v2080_v20 = vadd.f32 %v2064_v42, %v7157_v18 }
 0x993   :  { %v2079_v44 = vadd.f32 %v2063_v43, %v7160_v56  ;;  %v4804_v21 = vpop.f32.mrb[92].mxu0  ;;  %5681 = vmatprep.subr.bf16.mxu1 %v5680_v45 }
 0x994   :  { %v2066_v49 = vmul.f32 0.083333336, %v4804_v21  ;;  %v2034_v46 = vpop.f32.mrb[93].mxu0  ;;  %5683 = vmatpush3.bf16.msra.mxu1 %v5680_v45 }
 0x995   :  { %v2065_v50 = vmul.f32 0.083333336, %v2034_v46  ;;  %v5684_v47 = vpack.c.bf16 %v2080_v20, %v2079_v44 }
 0x996   :  { %v2082_v15 = vadd.f32 %v2066_v49, %v7163_v9 }
 0x997   :  { %v2081_v12 = vadd.f32 %v2065_v50, %v7166_v55  ;;  %v4807_v51 = vpop.f32.mrb[94].mxu0  ;;  %5685 = vmatprep.subr.bf16.mxu1 %v5684_v47 }
 0x998   :  { %v2068_v52 = vmul.f32 0.083333336, %v4807_v51  ;;  %v2044_v36 = vpop.f32.mrb[95].mxu0  ;;  %5687 = vmatpush3.bf16.msra.mxu1 %v5684_v47 }
 0x999   :  { %v2067_v41 = vmul.f32 0.083333336, %v2044_v36  ;;  %v5688_v18 = vpack.c.bf16 %v2082_v15, %v2081_v12 }
 0x99a   :  { %v2084_v56 = vadd.f32 %v2068_v52, %v7169_v24 }
 0x99b   :  { %v2083_v17 = vadd.f32 %v2067_v41, %v7172_v53  ;;  %5689 = vmatprep.subr.bf16.mxu1 %v5688_v18 }
 0x99c   :  { %5691 = vmatpush3.bf16.msra.mxu1 %v5688_v18 }
 0x99d   :  { %v5692_v57 = vpack.c.bf16 %v2084_v56, %v2083_v17 }
 0x99f   :  { %5693 = vmatprep.subr.bf16.mxu1 %v5692_v57 }
 0x9a0   :  { %5695 = vmatpush3.bf16.msra.mxu1 %v5692_v57 }
 0x9a3   :  { %4841 = vmatmul.mubr.f32.vlgmr.msra.gmra.mrb[80].mxu1 %v7175_v6 }
 0x9a4   :  { %4843 = vmatprep.mubr.f32.mxu1 %v2071_v14 }
 0x9a7   :  { %4844 = vmatmul.mubr.f32.gmra.mrb[82].mxu1 %v2072_v63 }
 0x9a8   :  { %4846 = vmatprep.mubr.f32.mxu1 %v2073_v28 }
 0x9ab   :  { %4847 = vmatmul.mubr.f32.gmra.mrb[84].mxu1 %v2074_v31 }
 0x9ac   :  { %4849 = vmatprep.mubr.f32.mxu1 %v2075_v1 }
 0x9af   :  { %4850 = vmatmul.mubr.f32.gmra.mrb[86].mxu1 %v2076_v33 }
 0x9b0   :  { %4852 = vmatprep.mubr.f32.mxu1 %v2077_v11 }
 0x9b3   :  { %4853 = vmatmul.mubr.f32.gmra.mrb[88].mxu1 %v2078_v39 }
 0x9b4   :  { %4855 = vmatprep.mubr.f32.mxu1 %v2079_v44 }
 0x9b7   :  { %4856 = vmatmul.mubr.f32.gmra.mrb[90].mxu1 %v2080_v20 }
 0x9b8   :  { %4858 = vmatprep.mubr.f32.mxu1 %v2081_v12 }
 0x9bb   :  { %4859 = vmatmul.mubr.f32.gmra.mrb[92].mxu1 %v2082_v15 }
 0x9bc   :  { %4861 = vmatprep.mubr.f32.mxu1 %v2083_v17 }
 0x9bf   :  { %4862 = vmatmul.mubr.f32.gmra.mrb[94].mxu1 %v2084_v56 }
 0xa76   :  { %v4842_v9 = vpop.f32.mrb[80].mxu1 }
 0xa77   :  { %v2151_v55 = vpop.f32.mrb[81].mxu1 }
 0xa78   :  { %v5696_v60 = vpack.c.bf16 %v4842_v9, %v2151_v55  ;;  %4896 = vmatprep.mubr.f32.mxu0 %v2151_v55 }
 0xa7a   :  { %v4845_v22 = vpop.f32.mrb[82].mxu1  ;;  %5697 = vmatprep.subr.bf16.mxu0 %v5696_v60 }
 0xa7b   :  { %v2161_v25 = vpop.f32.mrb[83].mxu1  ;;  %5699 = vmatpush3.bf16.msra.mxu0 %v5696_v60 }
 0xa7c   :  { %v5700_v0 = vpack.c.bf16 %v4845_v22, %v2161_v25 }
 0xa7e   :  { %v4848_v24 = vpop.f32.mrb[84].mxu1  ;;  %5701 = vmatprep.subr.bf16.mxu0 %v5700_v0 }
 0xa7f   :  { %v2171_v53 = vpop.f32.mrb[85].mxu1  ;;  %5703 = vmatpush3.bf16.msra.mxu0 %v5700_v0 }
 0xa80   :  { %v5704_v59 = vpack.c.bf16 %v4848_v24, %v2171_v53 }
 0xa82   :  { %v4851_v16 = vpop.f32.mrb[86].mxu1  ;;  %5705 = vmatprep.subr.bf16.mxu0 %v5704_v59 }
 0xa83   :  { %v2181_v54 = vpop.f32.mrb[87].mxu1  ;;  %5707 = vmatpush3.bf16.msra.mxu0 %v5704_v59 }
 0xa84   :  { %v5708_v3 = vpack.c.bf16 %v4851_v16, %v2181_v54 }
 0xa86   :  { %v4854_v6 = vpop.f32.mrb[88].mxu1  ;;  %5709 = vmatprep.subr.bf16.mxu0 %v5708_v3 }
 0xa87   :  { %v2191_v30 = vpop.f32.mrb[89].mxu1  ;;  %5711 = vmatpush3.bf16.msra.mxu0 %v5708_v3 }
 0xa88   :  { %v5712_v61 = vpack.c.bf16 %v4854_v6, %v2191_v30 }
 0xa8a   :  { %v4857_v19 = vpop.f32.mrb[90].mxu1  ;;  %5713 = vmatprep.subr.bf16.mxu0 %v5712_v61 }
 0xa8b   :  { %v2201_v13 = vpop.f32.mrb[91].mxu1  ;;  %5715 = vmatpush3.bf16.msra.mxu0 %v5712_v61 }
 0xa8c   :  { %v5716_v58 = vpack.c.bf16 %v4857_v19, %v2201_v13 }
 0xa8e   :  { %v4860_v29 = vpop.f32.mrb[92].mxu1  ;;  %5717 = vmatprep.subr.bf16.mxu0 %v5716_v58 }
 0xa8f   :  { %v2211_v63 = vpop.f32.mrb[93].mxu1  ;;  %5719 = vmatpush3.bf16.msra.mxu0 %v5716_v58 }
 0xa90   :  { %v5720_v14 = vpack.c.bf16 %v4860_v29, %v2211_v63 }
 0xa92   :  { %v4863_v23 = vpop.f32.mrb[94].mxu1  ;;  %5721 = vmatprep.subr.bf16.mxu0 %v5720_v14 }
 0xa93   :  { %v2221_v8 = vpop.f32.mrb[95].mxu1  ;;  %5723 = vmatpush3.bf16.msra.mxu0 %v5720_v14 }
 0xa94   :  { %v5724_v26 = vpack.c.bf16 %v4863_v23, %v2221_v8 }
 0xa96   :  { %5725 = vmatprep.subr.bf16.mxu0 %v5724_v26 }
 0xa97   :  { %5727 = vmatpush3.bf16.msra.mxu0 %v5724_v26 }
 0xa9a   :  { %4897 = vmatmul.mubr.f32.vlgmr.msra.gmra.mrb[96].mxu0 %v4842_v9 }
 0xa9b   :  { %4899 = vmatprep.mubr.f32.mxu0 %v2161_v25 }
 0xa9e   :  { %4900 = vmatmul.mubr.f32.gmra.mrb[98].mxu0 %v4845_v22 }
 0xa9f   :  { %4902 = vmatprep.mubr.f32.mxu0 %v2171_v53 }
 0xaa2   :  { %4903 = vmatmul.mubr.f32.gmra.mrb[100].mxu0 %v4848_v24 }
 0xaa3   :  { %4905 = vmatprep.mubr.f32.mxu0 %v2181_v54 }
 0xaa6   :  { %4906 = vmatmul.mubr.f32.gmra.mrb[102].mxu0 %v4851_v16 }
 0xaa7   :  { %4908 = vmatprep.mubr.f32.mxu0 %v2191_v30 }
 0xaaa   :  { %4909 = vmatmul.mubr.f32.gmra.mrb[104].mxu0 %v4854_v6 }
 0xaab   :  { %4911 = vmatprep.mubr.f32.mxu0 %v2201_v13 }
 0xaae   :  { %4912 = vmatmul.mubr.f32.gmra.mrb[106].mxu0 %v4857_v19 }
 0xaaf   :  { %4914 = vmatprep.mubr.f32.mxu0 %v2211_v63 }
 0xab2   :  { %4915 = vmatmul.mubr.f32.gmra.mrb[108].mxu0 %v4860_v29 }
 0xab3   :  { %4917 = vmatprep.mubr.f32.mxu0 %v2221_v8 }
 0xab6   :  { %4918 = vmatmul.mubr.f32.gmra.mrb[110].mxu0 %v4863_v23 }
 0xb6d   :  { %v4898_v62 = vpop.f32.mrb[96].mxu0 }
 0xb6e   :  { %v2296_v35 = vpop.f32.mrb[97].mxu0 }
 0xb6f   :  { %v5728_v31 = vpack.c.bf16 %v4898_v62, %v2296_v35  ;;  %4952 = vmatprep.mubr.f32.mxu1 %v2296_v35 }
 0xb71   :  { %v4901_v28 = vpop.f32.mrb[98].mxu0  ;;  %5729 = vmatprep.subr.bf16.mxu1 %v5728_v31 }
 0xb72   :  { %v2306_v34 = vpop.f32.mrb[99].mxu0  ;;  %5731 = vmatpush3.bf16.msra.mxu1 %v5728_v31 }
 0xb73   :  { %v5732_v27 = vpack.c.bf16 %v4901_v28, %v2306_v34 }
 0xb75   :  { %v4904_v5 = vpop.f32.mrb[100].mxu0  ;;  %5733 = vmatprep.subr.bf16.mxu1 %v5732_v27 }
 0xb76   :  { %v2316_v4 = vpop.f32.mrb[101].mxu0  ;;  %5735 = vmatpush3.bf16.msra.mxu1 %v5732_v27 }
 0xb77   :  { %v5736_v32 = vpack.c.bf16 %v4904_v5, %v2316_v4 }
 0xb79   :  { %v4907_v33 = vpop.f32.mrb[102].mxu0  ;;  %5737 = vmatprep.subr.bf16.mxu1 %v5736_v32 }
 0xb7a   :  { %v2326_v1 = vpop.f32.mrb[103].mxu0  ;;  %5739 = vmatpush3.bf16.msra.mxu1 %v5736_v32 }
 0xb7b   :  { %v5740_v40 = vpack.c.bf16 %v4907_v33, %v2326_v1 }
 0xb7d   :  { %v4910_v37 = vpop.f32.mrb[104].mxu0  ;;  %5741 = vmatprep.subr.bf16.mxu1 %v5740_v40 }
 0xb7e   :  { %v2336_v10 = vpop.f32.mrb[105].mxu0  ;;  %5743 = vmatpush3.bf16.msra.mxu1 %v5740_v40 }
 0xb7f   :  { %v5744_v2 = vpack.c.bf16 %v4910_v37, %v2336_v10 }
 0xb81   :  { %v4913_v38 = vpop.f32.mrb[106].mxu0  ;;  %5745 = vmatprep.subr.bf16.mxu1 %v5744_v2 }
 0xb82   :  { %v2346_v39 = vpop.f32.mrb[107].mxu0  ;;  %5747 = vmatpush3.bf16.msra.mxu1 %v5744_v2 }
 0xb83   :  { %v5748_v11 = vpack.c.bf16 %v4913_v38, %v2346_v39 }
 0xb85   :  { %v4916_v7 = vpop.f32.mrb[108].mxu0  ;;  %5749 = vmatprep.subr.bf16.mxu1 %v5748_v11 }
 0xb86   :  { %v2356_v42 = vpop.f32.mrb[109].mxu0  ;;  %5751 = vmatpush3.bf16.msra.mxu1 %v5748_v11 }
 0xb87   :  { %v5752_v48 = vpack.c.bf16 %v4916_v7, %v2356_v42 }
 0xb89   :  { %v4919_v43 = vpop.f32.mrb[110].mxu0  ;;  %5753 = vmatprep.subr.bf16.mxu1 %v5752_v48 }
 0xb8a   :  { %v2366_v45 = vpop.f32.mrb[111].mxu0  ;;  %5755 = vmatpush3.bf16.msra.mxu1 %v5752_v48 }
 0xb8b   :  { %v5756_v20 = vpack.c.bf16 %v4919_v43, %v2366_v45 }
 0xb8d   :  { %5757 = vmatprep.subr.bf16.mxu1 %v5756_v20 }
 0xb8e   :  { %5759 = vmatpush3.bf16.msra.mxu1 %v5756_v20 }
 0xb91   :  { %4953 = vmatmul.mubr.f32.vlgmr.msra.gmra.mrb[96].mxu1 %v4898_v62 }
 0xb92   :  { %4955 = vmatprep.mubr.f32.mxu1 %v2306_v34 }
 0xb95   :  { %4956 = vmatmul.mubr.f32.gmra.mrb[98].mxu1 %v4901_v28 }
 0xb96   :  { %4958 = vmatprep.mubr.f32.mxu1 %v2316_v4 }
 0xb99   :  { %4959 = vmatmul.mubr.f32.gmra.mrb[100].mxu1 %v4904_v5 }
 0xb9a   :  { %4961 = vmatprep.mubr.f32.mxu1 %v2326_v1 }
 0xb9d   :  { %4962 = vmatmul.mubr.f32.gmra.mrb[102].mxu1 %v4907_v33 }
 0xb9e   :  { %4964 = vmatprep.mubr.f32.mxu1 %v2336_v10 }
 0xba1   :  { %4965 = vmatmul.mubr.f32.gmra.mrb[104].mxu1 %v4910_v37 }
 0xba2   :  { %4967 = vmatprep.mubr.f32.mxu1 %v2346_v39 }
 0xba5   :  { %4968 = vmatmul.mubr.f32.gmra.mrb[106].mxu1 %v4913_v38 }
 0xba6   :  { %4970 = vmatprep.mubr.f32.mxu1 %v2356_v42 }
 0xba9   :  { %4971 = vmatmul.mubr.f32.gmra.mrb[108].mxu1 %v4916_v7 }
 0xbaa   :  { %4973 = vmatprep.mubr.f32.mxu1 %v2366_v45 }
 0xbad   :  { %4974 = vmatmul.mubr.f32.gmra.mrb[110].mxu1 %v4919_v43 }
 0xc64   :  { %v4954_v44 = vpop.f32.mrb[96].mxu1 }
 0xc65   :  { %v2441_v21 = vpop.f32.mrb[97].mxu1 }
 0xc66   :  { %v5760_v49 = vpack.c.bf16 %v4954_v44, %v2441_v21  ;;  %5008 = vmatprep.mubr.f32.mxu0 %v2441_v21 }
 0xc68   :  { %v4957_v46 = vpop.f32.mrb[98].mxu1  ;;  %5761 = vmatprep.subr.bf16.mxu0 %v5760_v49 }
 0xc69   :  { %v2451_v50 = vpop.f32.mrb[99].mxu1  ;;  %5763 = vmatpush3.bf16.msra.mxu0 %v5760_v49 }
 0xc6a   :  { %v5764_v47 = vpack.c.bf16 %v4957_v46, %v2451_v50 }
 0xc6c   :  { %v4960_v15 = vpop.f32.mrb[100].mxu1  ;;  %5765 = vmatprep.subr.bf16.mxu0 %v5764_v47 }
 0xc6d   :  { %v2461_v12 = vpop.f32.mrb[101].mxu1  ;;  %5767 = vmatpush3.bf16.msra.mxu0 %v5764_v47 }
 0xc6e   :  { %v5768_v51 = vpack.c.bf16 %v4960_v15, %v2461_v12 }
 0xc70   :  { %v4963_v52 = vpop.f32.mrb[102].mxu1  ;;  %5769 = vmatprep.subr.bf16.mxu0 %v5768_v51 }
 0xc71   :  { %v2471_v36 = vpop.f32.mrb[103].mxu1  ;;  %5771 = vmatpush3.bf16.msra.mxu0 %v5768_v51 }
 0xc72   :  { %v5772_v41 = vpack.c.bf16 %v4963_v52, %v2471_v36 }
 0xc74   :  { %v4966_v18 = vpop.f32.mrb[104].mxu1  ;;  %5773 = vmatprep.subr.bf16.mxu0 %v5772_v41 }
 0xc75   :  { %v2481_v56 = vpop.f32.mrb[105].mxu1  ;;  %5775 = vmatpush3.bf16.msra.mxu0 %v5772_v41 }
 0xc76   :  { %v5776_v17 = vpack.c.bf16 %v4966_v18, %v2481_v56 }
 0xc78   :  { %v4969_v57 = vpop.f32.mrb[106].mxu1  ;;  %5777 = vmatprep.subr.bf16.mxu0 %v5776_v17 }
 0xc79   :  { %v2491_v9 = vpop.f32.mrb[107].mxu1  ;;  %5779 = vmatpush3.bf16.msra.mxu0 %v5776_v17 }
 0xc7a   :  { %v5780_v55 = vpack.c.bf16 %v4969_v57, %v2491_v9 }
 0xc7c   :  { %v4972_v60 = vpop.f32.mrb[108].mxu1  ;;  %5781 = vmatprep.subr.bf16.mxu0 %v5780_v55 }
 0xc7d   :  { %v2501_v22 = vpop.f32.mrb[109].mxu1  ;;  %5783 = vmatpush3.bf16.msra.mxu0 %v5780_v55 }
 0xc7e   :  { %v5784_v25 = vpack.c.bf16 %v4972_v60, %v2501_v22 }
 0xc80   :  { %v4975_v0 = vpop.f32.mrb[110].mxu1  ;;  %5785 = vmatprep.subr.bf16.mxu0 %v5784_v25 }
 0xc81   :  { %v2511_v24 = vpop.f32.mrb[111].mxu1  ;;  %5787 = vmatpush3.bf16.msra.mxu0 %v5784_v25 }
 0xc82   :  { %v5788_v53 = vpack.c.bf16 %v4975_v0, %v2511_v24 }
 0xc84   :  { %5789 = vmatprep.subr.bf16.mxu0 %v5788_v53 }
 0xc85   :  { %5791 = vmatpush3.bf16.msra.mxu0 %v5788_v53 }
 0xc88   :  { %5009 = vmatmul.mubr.f32.vlgmr.msra.gmra.mrb[112].mxu0 %v4954_v44 }
 0xc89   :  { %5011 = vmatprep.mubr.f32.mxu0 %v2451_v50 }
 0xc8c   :  { %5012 = vmatmul.mubr.f32.gmra.mrb[114].mxu0 %v4957_v46 }
 0xc8d   :  { %5014 = vmatprep.mubr.f32.mxu0 %v2461_v12 }
 0xc90   :  { %5015 = vmatmul.mubr.f32.gmra.mrb[116].mxu0 %v4960_v15 }
 0xc91   :  { %5017 = vmatprep.mubr.f32.mxu0 %v2471_v36 }
 0xc94   :  { %5018 = vmatmul.mubr.f32.gmra.mrb[118].mxu0 %v4963_v52 }
 0xc95   :  { %5020 = vmatprep.mubr.f32.mxu0 %v2481_v56 }
 0xc98   :  { %5021 = vmatmul.mubr.f32.gmra.mrb[120].mxu0 %v4966_v18 }
 0xc99   :  { %5023 = vmatprep.mubr.f32.mxu0 %v2491_v9 }
 0xc9c   :  { %5024 = vmatmul.mubr.f32.gmra.mrb[122].mxu0 %v4969_v57 }
 0xc9d   :  { %5026 = vmatprep.mubr.f32.mxu0 %v2501_v22 }
 0xca0   :  { %5027 = vmatmul.mubr.f32.gmra.mrb[124].mxu0 %v4972_v60 }
 0xca1   :  { %5029 = vmatprep.mubr.f32.mxu0 %v2511_v24 }
 0xca4   :  { %5030 = vmatmul.mubr.f32.gmra.mrb[126].mxu0 %v4975_v0 }
 0xd5b   :  { %v5010_v59 = vpop.f32.mrb[112].mxu0 }
 0xd5c   :  { %v2586_v16 = vpop.f32.mrb[113].mxu0 }
 0xd5d   :  { %v5792_v54 = vpack.c.bf16 %v5010_v59, %v2586_v16  ;;  %5064 = vmatprep.mubr.f32.mxu1 %v2586_v16 }
 0xd5f   :  { %v5013_v3 = vpop.f32.mrb[114].mxu0  ;;  %5793 = vmatprep.subr.bf16.mxu1 %v5792_v54 }
 0xd60   :  { %v2596_v6 = vpop.f32.mrb[115].mxu0  ;;  %5795 = vmatpush3.bf16.msra.mxu1 %v5792_v54 }
 0xd61   :  { %v5796_v30 = vpack.c.bf16 %v5013_v3, %v2596_v6 }
 0xd63   :  { %v5016_v61 = vpop.f32.mrb[116].mxu0  ;;  %5797 = vmatprep.subr.bf16.mxu1 %v5796_v30 }
 0xd64   :  { %v2606_v19 = vpop.f32.mrb[117].mxu0  ;;  %5799 = vmatpush3.bf16.msra.mxu1 %v5796_v30 }
 0xd65   :  { %v5800_v13 = vpack.c.bf16 %v5016_v61, %v2606_v19 }
 0xd67   :  { %v5019_v58 = vpop.f32.mrb[118].mxu0  ;;  %5801 = vmatprep.subr.bf16.mxu1 %v5800_v13 }
 0xd68   :  { %v2616_v29 = vpop.f32.mrb[119].mxu0  ;;  %5803 = vmatpush3.bf16.msra.mxu1 %v5800_v13 }
 0xd69   :  { %v5804_v63 = vpack.c.bf16 %v5019_v58, %v2616_v29 }
 0xd6b   :  { %v5022_v14 = vpop.f32.mrb[120].mxu0  ;;  %5805 = vmatprep.subr.bf16.mxu1 %v5804_v63 }
 0xd6c   :  { %v2626_v23 = vpop.f32.mrb[121].mxu0  ;;  %5807 = vmatpush3.bf16.msra.mxu1 %v5804_v63 }
 0xd6d   :  { %v5808_v8 = vpack.c.bf16 %v5022_v14, %v2626_v23 }
 0xd6f   :  { %v5025_v26 = vpop.f32.mrb[122].mxu0  ;;  %5809 = vmatprep.subr.bf16.mxu1 %v5808_v8 }
 0xd70   :  { %v2636_v62 = vpop.f32.mrb[123].mxu0  ;;  %5811 = vmatpush3.bf16.msra.mxu1 %v5808_v8 }
 0xd71   :  { %v5812_v35 = vpack.c.bf16 %v5025_v26, %v2636_v62 }
 0xd73   :  { %v5028_v31 = vpop.f32.mrb[124].mxu0  ;;  %5813 = vmatprep.subr.bf16.mxu1 %v5812_v35 }
 0xd74   :  { %v2646_v28 = vpop.f32.mrb[125].mxu0  ;;  %5815 = vmatpush3.bf16.msra.mxu1 %v5812_v35 }
 0xd75   :  { %v5816_v34 = vpack.c.bf16 %v5028_v31, %v2646_v28 }
 0xd77   :  { %v5031_v27 = vpop.f32.mrb[126].mxu0  ;;  %5817 = vmatprep.subr.bf16.mxu1 %v5816_v34 }
 0xd78   :  { %v2656_v5 = vpop.f32.mrb[127].mxu0  ;;  %5819 = vmatpush3.bf16.msra.mxu1 %v5816_v34 }
 0xd79   :  { %v5820_v4 = vpack.c.bf16 %v5031_v27, %v2656_v5 }
 0xd7b   :  { %5821 = vmatprep.subr.bf16.mxu1 %v5820_v4 }
 0xd7c   :  { %5823 = vmatpush3.bf16.msra.mxu1 %v5820_v4 }
 0xd7f   :  { %5065 = vmatmul.mubr.f32.vlgmr.msra.gmra.mrb[112].mxu1 %v5010_v59 }
 0xd80   :  { %5067 = vmatprep.mubr.f32.mxu1 %v2596_v6 }
 0xd83   :  { %5068 = vmatmul.mubr.f32.gmra.mrb[114].mxu1 %v5013_v3 }
 0xd84   :  { %5070 = vmatprep.mubr.f32.mxu1 %v2606_v19 }
 0xd87   :  { %5071 = vmatmul.mubr.f32.gmra.mrb[116].mxu1 %v5016_v61 }
 0xd88   :  { %5073 = vmatprep.mubr.f32.mxu1 %v2616_v29 }
 0xd8b   :  { %5074 = vmatmul.mubr.f32.gmra.mrb[118].mxu1 %v5019_v58 }
 0xd8c   :  { %5076 = vmatprep.mubr.f32.mxu1 %v2626_v23 }
 0xd8f   :  { %5077 = vmatmul.mubr.f32.gmra.mrb[120].mxu1 %v5022_v14 }
 0xd90   :  { %5079 = vmatprep.mubr.f32.mxu1 %v2636_v62 }
 0xd93   :  { %5080 = vmatmul.mubr.f32.gmra.mrb[122].mxu1 %v5025_v26 }
 0xd94   :  { %5082 = vmatprep.mubr.f32.mxu1 %v2646_v28 }
 0xd97   :  { %5083 = vmatmul.mubr.f32.gmra.mrb[124].mxu1 %v5028_v31 }
 0xd98   :  { %5085 = vmatprep.mubr.f32.mxu1 %v2656_v5 }
 0xd9b   :  { %5086 = vmatmul.mubr.f32.gmra.mrb[126].mxu1 %v5031_v27 }
 0xe52   :  { %v5066_v32 = vpop.f32.mrb[112].mxu1 }
 0xe53   :  { %v2731_v33 = vpop.f32.mrb[113].mxu1 }
 0xe54   :  { %v5824_v1 = vpack.c.bf16 %v5066_v32, %v2731_v33  ;;  %5120 = vmatprep.mubr.f32.mxu0 %v2731_v33 }
 0xe56   :  { %v5069_v40 = vpop.f32.mrb[114].mxu1  ;;  %5825 = vmatprep.subr.bf16.mxu0 %v5824_v1 }
 0xe57   :  { %v2741_v37 = vpop.f32.mrb[115].mxu1  ;;  %5827 = vmatpush3.bf16.msra.mxu0 %v5824_v1 }
 0xe58   :  { %v5828_v10 = vpack.c.bf16 %v5069_v40, %v2741_v37 }
 0xe5a   :  { %v5072_v2 = vpop.f32.mrb[116].mxu1  ;;  %5829 = vmatprep.subr.bf16.mxu0 %v5828_v10 }
 0xe5b   :  { %v2751_v38 = vpop.f32.mrb[117].mxu1  ;;  %5831 = vmatpush3.bf16.msra.mxu0 %v5828_v10 }
 0xe5c   :  { %v5832_v39 = vpack.c.bf16 %v5072_v2, %v2751_v38 }
 0xe5e   :  { %v5075_v11 = vpop.f32.mrb[118].mxu1  ;;  %5833 = vmatprep.subr.bf16.mxu0 %v5832_v39 }
 0xe5f   :  { %v2761_v7 = vpop.f32.mrb[119].mxu1  ;;  %5835 = vmatpush3.bf16.msra.mxu0 %v5832_v39 }
 0xe60   :  { %v5836_v42 = vpack.c.bf16 %v5075_v11, %v2761_v7 }
 0xe62   :  { %v5078_v48 = vpop.f32.mrb[120].mxu1  ;;  %5837 = vmatprep.subr.bf16.mxu0 %v5836_v42 }
 0xe63   :  { %v2771_v43 = vpop.f32.mrb[121].mxu1  ;;  %5839 = vmatpush3.bf16.msra.mxu0 %v5836_v42 }
 0xe64   :  { %v5840_v45 = vpack.c.bf16 %v5078_v48, %v2771_v43 }
 0xe66   :  { %v5081_v20 = vpop.f32.mrb[122].mxu1  ;;  %5841 = vmatprep.subr.bf16.mxu0 %v5840_v45 }
 0xe67   :  { %v2781_v44 = vpop.f32.mrb[123].mxu1  ;;  %5843 = vmatpush3.bf16.msra.mxu0 %v5840_v45 }
 0xe68   :  { %v5844_v21 = vpack.c.bf16 %v5081_v20, %v2781_v44 }
 0xe6a   :  { %v5084_v49 = vpop.f32.mrb[124].mxu1  ;;  %5845 = vmatprep.subr.bf16.mxu0 %v5844_v21 }
 0xe6b   :  { %v2791_v46 = vpop.f32.mrb[125].mxu1  ;;  %5847 = vmatpush3.bf16.msra.mxu0 %v5844_v21 }
 0xe6c   :  { %v5848_v50 = vpack.c.bf16 %v5084_v49, %v2791_v46 }
 0xe6e   :  { %v5087_v47 = vpop.f32.mrb[126].mxu1  ;;  %5849 = vmatprep.subr.bf16.mxu0 %v5848_v50 }
 0xe6f   :  { %v2801_v15 = vpop.f32.mrb[127].mxu1  ;;  %5851 = vmatpush3.bf16.msra.mxu0 %v5848_v50 }
 0xe70   :  { %v5852_v12 = vpack.c.bf16 %v5087_v47, %v2801_v15 }
 0xe72   :  { %5853 = vmatprep.subr.bf16.mxu0 %v5852_v12 }
 0xe73   :  { %5855 = vmatpush3.bf16.msra.mxu0 %v5852_v12 }
 0xe76   :  { %5121 = vmatmul.mubr.f32.vlgmr.msra.gmra.mrb[128].mxu0 %v5066_v32 }
 0xe77   :  { %5123 = vmatprep.mubr.f32.mxu0 %v2741_v37 }
 0xe7a   :  { %5124 = vmatmul.mubr.f32.gmra.mrb[130].mxu0 %v5069_v40 }
 0xe7b   :  { %5126 = vmatprep.mubr.f32.mxu0 %v2751_v38 }
 0xe7e   :  { %5127 = vmatmul.mubr.f32.gmra.mrb[132].mxu0 %v5072_v2 }
 0xe7f   :  { %5129 = vmatprep.mubr.f32.mxu0 %v2761_v7 }
 0xe82   :  { %5130 = vmatmul.mubr.f32.gmra.mrb[134].mxu0 %v5075_v11 }
 0xe83   :  { %5132 = vmatprep.mubr.f32.mxu0 %v2771_v43 }
 0xe86   :  { %5133 = vmatmul.mubr.f32.gmra.mrb[136].mxu0 %v5078_v48 }
 0xe87   :  { %5135 = vmatprep.mubr.f32.mxu0 %v2781_v44 }
 0xe8a   :  { %5136 = vmatmul.mubr.f32.gmra.mrb[138].mxu0 %v5081_v20 }
 0xe8b   :  { %5138 = vmatprep.mubr.f32.mxu0 %v2791_v46 }
 0xe8e   :  { %5139 = vmatmul.mubr.f32.gmra.mrb[140].mxu0 %v5084_v49 }
 0xe8f   :  { %5141 = vmatprep.mubr.f32.mxu0 %v2801_v15 }
 0xe92   :  { %5142 = vmatmul.mubr.f32.gmra.mrb[142].mxu0 %v5087_v47 }
 0xf49   :  { %v5122_v51 = vpop.f32.mrb[128].mxu0 }
 0xf4a   :  { %v2876_v52 = vpop.f32.mrb[129].mxu0 }
 0xf4b   :  { %v5856_v36 = vpack.c.bf16 %v5122_v51, %v2876_v52  ;;  %5176 = vmatprep.mubr.f32.mxu1 %v2876_v52 }
 0xf4d   :  { %v5125_v41 = vpop.f32.mrb[130].mxu0  ;;  %5857 = vmatprep.subr.bf16.mxu1 %v5856_v36 }
 0xf4e   :  { %v2886_v18 = vpop.f32.mrb[131].mxu0  ;;  %5859 = vmatpush3.bf16.msra.mxu1 %v5856_v36 }
 0xf4f   :  { %v5860_v56 = vpack.c.bf16 %v5125_v41, %v2886_v18 }
 0xf51   :  { %v5128_v17 = vpop.f32.mrb[132].mxu0  ;;  %5861 = vmatprep.subr.bf16.mxu1 %v5860_v56 }
 0xf52   :  { %v2896_v57 = vpop.f32.mrb[133].mxu0  ;;  %5863 = vmatpush3.bf16.msra.mxu1 %v5860_v56 }
 0xf53   :  { %v5864_v9 = vpack.c.bf16 %v5128_v17, %v2896_v57 }
 0xf55   :  { %v5131_v55 = vpop.f32.mrb[134].mxu0  ;;  %5865 = vmatprep.subr.bf16.mxu1 %v5864_v9 }
 0xf56   :  { %v2906_v60 = vpop.f32.mrb[135].mxu0  ;;  %5867 = vmatpush3.bf16.msra.mxu1 %v5864_v9 }
 0xf57   :  { %v5868_v22 = vpack.c.bf16 %v5131_v55, %v2906_v60 }
 0xf59   :  { %v5134_v25 = vpop.f32.mrb[136].mxu0  ;;  %5869 = vmatprep.subr.bf16.mxu1 %v5868_v22 }
 0xf5a   :  { %v2916_v0 = vpop.f32.mrb[137].mxu0  ;;  %5871 = vmatpush3.bf16.msra.mxu1 %v5868_v22 }
 0xf5b   :  { %v5872_v24 = vpack.c.bf16 %v5134_v25, %v2916_v0 }
 0xf5d   :  { %v5137_v53 = vpop.f32.mrb[138].mxu0  ;;  %5873 = vmatprep.subr.bf16.mxu1 %v5872_v24 }
 0xf5e   :  { %v2926_v59 = vpop.f32.mrb[139].mxu0  ;;  %5875 = vmatpush3.bf16.msra.mxu1 %v5872_v24 }
 0xf5f   :  { %v5876_v16 = vpack.c.bf16 %v5137_v53, %v2926_v59 }
 0xf61   :  { %v5140_v54 = vpop.f32.mrb[140].mxu0  ;;  %5877 = vmatprep.subr.bf16.mxu1 %v5876_v16 }
 0xf62   :  { %v2936_v3 = vpop.f32.mrb[141].mxu0  ;;  %5879 = vmatpush3.bf16.msra.mxu1 %v5876_v16 }
 0xf63   :  { %v5880_v6 = vpack.c.bf16 %v5140_v54, %v2936_v3 }
 0xf65   :  { %v5143_v30 = vpop.f32.mrb[142].mxu0  ;;  %5881 = vmatprep.subr.bf16.mxu1 %v5880_v6 }
 0xf66   :  { %v2946_v61 = vpop.f32.mrb[143].mxu0  ;;  %5883 = vmatpush3.bf16.msra.mxu1 %v5880_v6 }
 0xf67   :  { %v5884_v19 = vpack.c.bf16 %v5143_v30, %v2946_v61 }
 0xf69   :  { %5885 = vmatprep.subr.bf16.mxu1 %v5884_v19 }
 0xf6a   :  { %5887 = vmatpush3.bf16.msra.mxu1 %v5884_v19 }
 0xf6d   :  { %5177 = vmatmul.mubr.f32.vlgmr.msra.gmra.mrb[128].mxu1 %v5122_v51 }
 0xf6e   :  { %5179 = vmatprep.mubr.f32.mxu1 %v2886_v18 }
 0xf71   :  { %5180 = vmatmul.mubr.f32.gmra.mrb[130].mxu1 %v5125_v41 }
 0xf72   :  { %5182 = vmatprep.mubr.f32.mxu1 %v2896_v57 }
 0xf75   :  { %5183 = vmatmul.mubr.f32.gmra.mrb[132].mxu1 %v5128_v17 }
 0xf76   :  { %5185 = vmatprep.mubr.f32.mxu1 %v2906_v60 }
 0xf79   :  { %5186 = vmatmul.mubr.f32.gmra.mrb[134].mxu1 %v5131_v55 }
 0xf7a   :  { %5188 = vmatprep.mubr.f32.mxu1 %v2916_v0 }
 0xf7d   :  { %5189 = vmatmul.mubr.f32.gmra.mrb[136].mxu1 %v5134_v25 }
 0xf7e   :  { %5191 = vmatprep.mubr.f32.mxu1 %v2926_v59 }
 0xf81   :  { %5192 = vmatmul.mubr.f32.gmra.mrb[138].mxu1 %v5137_v53 }
 0xf82   :  { %5194 = vmatprep.mubr.f32.mxu1 %v2936_v3 }
 0xf85   :  { %5195 = vmatmul.mubr.f32.gmra.mrb[140].mxu1 %v5140_v54 }
 0xf86   :  { %5197 = vmatprep.mubr.f32.mxu1 %v2946_v61 }
 0xf89   :  { %5198 = vmatmul.mubr.f32.gmra.mrb[142].mxu1 %v5143_v30 }
0x1040   :  { %v5178_v13 = vpop.f32.mrb[128].mxu1 }
0x1041   :  { %v3021_v58 = vpop.f32.mrb[129].mxu1 }
0x1042   :  { %v5888_v29 = vpack.c.bf16 %v5178_v13, %v3021_v58  ;;  %5232 = vmatprep.mubr.f32.mxu0 %v3021_v58 }
0x1044   :  { %v5181_v63 = vpop.f32.mrb[130].mxu1  ;;  %5889 = vmatprep.subr.bf16.mxu0 %v5888_v29  ;;  %5952 = vmatprep.subr.bf16.mxu1 %v5888_v29 }
0x1045   :  { %v3031_v14 = vpop.f32.mrb[131].mxu1  ;;  %5891 = vmatpush3.bf16.msra.mxu0 %v5888_v29  ;;  %5960 = vmatpush3.bf16.msra.mxu1 %v5888_v29 }
0x1046   :  { %v5892_v23 = vpack.c.bf16 %v5181_v63, %v3031_v14 }
0x1048   :  { %v5184_v8 = vpop.f32.mrb[132].mxu1  ;;  %5893 = vmatprep.subr.bf16.mxu0 %v5892_v23  ;;  %5953 = vmatprep.subr.bf16.mxu1 %v5892_v23 }
0x1049   :  { %v3041_v26 = vpop.f32.mrb[133].mxu1  ;;  %5895 = vmatpush3.bf16.msra.mxu0 %v5892_v23  ;;  %5961 = vmatpush3.bf16.msra.mxu1 %v5892_v23 }
0x104a   :  { %v5896_v62 = vpack.c.bf16 %v5184_v8, %v3041_v26 }
0x104c   :  { %v5187_v35 = vpop.f32.mrb[134].mxu1  ;;  %5897 = vmatprep.subr.bf16.mxu0 %v5896_v62  ;;  %5954 = vmatprep.subr.bf16.mxu1 %v5896_v62 }
0x104d   :  { %v3051_v31 = vpop.f32.mrb[135].mxu1  ;;  %5899 = vmatpush3.bf16.msra.mxu0 %v5896_v62  ;;  %5962 = vmatpush3.bf16.msra.mxu1 %v5896_v62 }
0x104e   :  { %v5900_v28 = vpack.c.bf16 %v5187_v35, %v3051_v31 }
0x1050   :  { %v5190_v34 = vpop.f32.mrb[136].mxu1  ;;  %5901 = vmatprep.subr.bf16.mxu0 %v5900_v28  ;;  %5955 = vmatprep.subr.bf16.mxu1 %v5900_v28 }
0x1051   :  { %v3061_v27 = vpop.f32.mrb[137].mxu1  ;;  %5903 = vmatpush3.bf16.msra.mxu0 %v5900_v28  ;;  %5963 = vmatpush3.bf16.msra.mxu1 %v5900_v28 }
0x1052   :  { %v5904_v5 = vpack.c.bf16 %v5190_v34, %v3061_v27  ;;  %5244 = vmatprep.mubr.f32.mxu1 %v3061_v27 }
0x1054   :  { %v5193_v4 = vpop.f32.mrb[138].mxu1  ;;  %5905 = vmatprep.subr.bf16.mxu0 %v5904_v5  ;;  %5956 = vmatprep.subr.bf16.mxu1 %v5904_v5 }
0x1055   :  { %v3071_v32 = vpop.f32.mrb[139].mxu1  ;;  %5907 = vmatpush3.bf16.msra.mxu0 %v5904_v5  ;;  %5964 = vmatpush3.bf16.msra.mxu1 %v5904_v5 }
0x1056   :  { %v5908_v33 = vpack.c.bf16 %v5193_v4, %v3071_v32 }
0x1058   :  { %v5196_v1 = vpop.f32.mrb[140].mxu1  ;;  %5909 = vmatprep.subr.bf16.mxu0 %v5908_v33  ;;  %5957 = vmatprep.subr.bf16.mxu1 %v5908_v33 }
0x1059   :  { %v3081_v40 = vpop.f32.mrb[141].mxu1  ;;  %5911 = vmatpush3.bf16.msra.mxu0 %v5908_v33  ;;  %5965 = vmatpush3.bf16.msra.mxu1 %v5908_v33 }
0x105a   :  { %v5912_v37 = vpack.c.bf16 %v5196_v1, %v3081_v40 }
0x105c   :  { %v5199_v10 = vpop.f32.mrb[142].mxu1  ;;  %5913 = vmatprep.subr.bf16.mxu0 %v5912_v37  ;;  %5958 = vmatprep.subr.bf16.mxu1 %v5912_v37 }
0x105d   :  { %v3091_v2 = vpop.f32.mrb[143].mxu1  ;;  %5915 = vmatpush3.bf16.msra.mxu0 %v5912_v37  ;;  %5966 = vmatpush3.bf16.msra.mxu1 %v5912_v37 }
0x105e   :  { %v5916_v38 = vpack.c.bf16 %v5199_v10, %v3091_v2 }
0x1060   :  { %5917 = vmatprep.subr.bf16.mxu0 %v5916_v38  ;;  %5959 = vmatprep.subr.bf16.mxu1 %v5916_v38 }
0x1061   :  { %5919 = vmatpush3.bf16.msra.mxu0 %v5916_v38  ;;  %5967 = vmatpush3.bf16.msra.mxu1 %v5916_v38 }
0x1064   :  { %5233 = vmatmul.mubr.f32.vlgmr.msra.gmra.mrb[144].mxu0 %v5178_v13  ;;  %5245 = vmatmul.mubr.f32.vlgmr.msra.gmra.mrb[144].mxu1 %v5190_v34 }
0x1065   :  { %5235 = vmatprep.mubr.f32.mxu0 %v3031_v14  ;;  %5247 = vmatprep.mubr.f32.mxu1 %v3071_v32 }
0x1068   :  { %5236 = vmatmul.mubr.f32.gmra.mrb[146].mxu0 %v5181_v63  ;;  %5248 = vmatmul.mubr.f32.gmra.mrb[146].mxu1 %v5193_v4 }
0x1069   :  { %5238 = vmatprep.mubr.f32.mxu0 %v3041_v26  ;;  %5250 = vmatprep.mubr.f32.mxu1 %v3081_v40 }
0x106c   :  { %5239 = vmatmul.mubr.f32.gmra.mrb[148].mxu0 %v5184_v8  ;;  %5251 = vmatmul.mubr.f32.gmra.mrb[148].mxu1 %v5196_v1 }
0x106d   :  { %5241 = vmatprep.mubr.f32.mxu0 %v3051_v31  ;;  %5253 = vmatprep.mubr.f32.mxu1 %v3091_v2 }
0x1070   :  { %5242 = vmatmul.mubr.f32.gmra.mrb[150].mxu0 %v5187_v35  ;;  %5254 = vmatmul.mubr.f32.gmra.mrb[150].mxu1 %v5199_v10 }
0x1137   :  { %v7194_v39 = vpop.f32.mrb[144].mxu0   ;;  %v7196_v11 = vpop.f32.mrb[144].mxu1  }
0x1138   :  { %3263 = vst [vmem:[#allocation5 + $0x88] sm:$0xff] %v7194_v39  ;;  %3271 = vst [vmem:[#allocation5 + $0xc8] sm:$0xff] %v7196_v11  ;;  %v7200_v7 = vpop.f32.mrb[145].mxu0   ;;  %v7202_v42 = vpop.f32.mrb[145].mxu1   ;;  %v7403_v22 = vmov %v7196_v11  ;;  %v7407_v53 = vmov %v7194_v39 }
0x1139   :  { %3262 = vst [vmem:[#allocation5 + $0x80] sm:$0xff] %v7200_v7  ;;  %3270 = vst [vmem:[#allocation5 + $0xc0] sm:$0xff] %v7202_v42  ;;  %v7395_v41 = vmov %v7202_v42  ;;  %v7399_v57 = vmov %v7200_v7 }
0x113b   :  { %v7206_v48 = vpop.f32.mrb[146].mxu0   ;;  %v7208_v43 = vpop.f32.mrb[146].mxu1  }
0x113c   :  { %3265 = vst [vmem:[#allocation5 + $0x98] sm:$0xff] %v7206_v48  ;;  %3273 = vst [vmem:[#allocation5 + $0xd8] sm:$0xff] %v7208_v43  ;;  %v7212_v45 = vpop.f32.mrb[147].mxu0   ;;  %v7214_v20 = vpop.f32.mrb[147].mxu1   ;;  %v7402_v60 = vmov %v7208_v43  ;;  %v7406_v24 = vmov %v7206_v48 }
0x113d   :  { %3264 = vst [vmem:[#allocation5 + $0x90] sm:$0xff] %v7212_v45  ;;  %3272 = vst [vmem:[#allocation5 + $0xd0] sm:$0xff] %v7214_v20  ;;  %v7394_v36 = vmov %v7214_v20  ;;  %v7398_v17 = vmov %v7212_v45 }
0x113f   :  { %v7218_v44 = vpop.f32.mrb[148].mxu0   ;;  %v7220_v21 = vpop.f32.mrb[148].mxu1  }
0x1140   :  { %3267 = vst [vmem:[#allocation5 + $0xa8] sm:$0xff] %v7218_v44  ;;  %3275 = vst [vmem:[#allocation5 + $0xe8] sm:$0xff] %v7220_v21  ;;  %v7224_v49 = vpop.f32.mrb[149].mxu0   ;;  %v7226_v46 = vpop.f32.mrb[149].mxu1   ;;  %v7401_v55 = vmov %v7220_v21  ;;  %v7405_v0 = vmov %v7218_v44 }
0x1141   :  { %3266 = vst [vmem:[#allocation5 + $0xa0] sm:$0xff] %v7224_v49  ;;  %3274 = vst [vmem:[#allocation5 + $0xe0] sm:$0xff] %v7226_v46  ;;  %v7393_v52 = vmov %v7226_v46  ;;  %v7397_v56 = vmov %v7224_v49 }
0x1143   :  { %v7230_v50 = vpop.f32.mrb[150].mxu0   ;;  %v7232_v47 = vpop.f32.mrb[150].mxu1  }
0x1144   :  { %3269 = vst [vmem:[#allocation5 + $0xb8] sm:$0xff] %v7230_v50  ;;  %3277 = vst [vmem:[#allocation5 + $0xf8] sm:$0xff] %v7232_v47  ;;  %v7236_v15 = vpop.f32.mrb[151].mxu0   ;;  %v7238_v12 = vpop.f32.mrb[151].mxu1   ;;  %v7400_v9 = vmov %v7232_v47  ;;  %v7404_v25 = vmov %v7230_v50 }
0x1145   :  { %3268 = vst [vmem:[#allocation5 + $0xb0] sm:$0xff] %v7236_v15  ;;  %3276 = vst [vmem:[#allocation5 + $0xf0] sm:$0xff] %v7238_v12  ;;  %v7392_v51 = vmov %v7238_v12  ;;  %v7396_v18 = vmov %v7236_v15 }
0x1146 LB: > { %v5920_v59 = vpack.c.bf16 %v7194_v39, %v7200_v7  ;;  %v5924_v16 = vpack.c.bf16 %v7206_v48, %v7212_v45  ;;  %v5928_v54 = vpack.c.bf16 %v7218_v44, %v7224_v49  ;;  %5297 = vmatprep.mubr.f32.mxu1 %v6259_v18  ;;  %v5932_v3 = vpack.c.bf16 %v7230_v50, %v7236_v15  ;;  %s3551_s20 = sshll.u32 %s6307_s0, 7  ;;  %s3283_s0 = sadd.s32 1, %s6307_s0   ;;  %s6307_s0 = sphi %s7290_s0, %s3283_s0   ;;  %v6303_v53 = vphi %v7407_v53, %v5290_v53   ;;  %v6299_v24 = vphi %v7406_v24, %v5293_v24   ;;  %v6295_v0 = vphi %v7405_v0, %v5296_v0   ;;  %v6291_v25 = vphi %v7404_v25, %v5299_v25   ;;  %v6287_v22 = vphi %v7403_v22, %v5302_v22   ;;  %v6283_v60 = vphi %v7402_v60, %v5305_v60   ;;  %v6279_v55 = vphi %v7401_v55, %v5308_v55   ;;  %v6275_v9 = vphi %v7400_v9, %v5311_v9   ;;  %v6271_v57 = vphi %v7399_v57, %v3366_v57   ;;  %v6267_v17 = vphi %v7398_v17, %v3376_v17   ;;  %v6263_v56 = vphi %v7397_v56, %v3386_v56   ;;  %v6259_v18 = vphi %v7396_v18, %v3396_v18   ;;  %v6255_v41 = vphi %v7395_v41, %v3406_v41   ;;  %v6251_v36 = vphi %v7394_v36, %v3416_v36   ;;  %v6247_v52 = vphi %v7393_v52, %v3426_v52   ;;  %v6243_v51 = vphi %v7392_v51, %v3436_v51  }
0x1147   : > { %v5936_v6 = vpack.c.bf16 %v7196_v11, %v7202_v42  ;;  %v5940_v30 = vpack.c.bf16 %v7208_v43, %v7214_v20  ;;  %v5944_v61 = vpack.c.bf16 %v7220_v21, %v7226_v46  ;;  %v5948_v19 = vpack.c.bf16 %v7232_v47, %v7238_v12  ;;  %s3446_s21 = scalar_lea.vmem [#allocation5], %s3551_s20  ;;  %p7335_p8 = scmp.ge.s32.totalorder %s3283_s0, 9  }
0x1148   : > { %5921 = vmatprep.subr.bf16.mxu0 %v5920_v59  ;;  %5968 = vmatprep.subr.bf16.mxu1 %v5920_v59  ;;  %s6313_s23 = smov (%p7335_p8), [#allocation5]  }
0x1149   : > { %5923 = vmatpush3.bf16.msra.mxu0 %v5920_v59  ;;  %5976 = vmatpush3.bf16.msra.mxu1 %v5920_v59  ;;  %s3468_s24 = sshll.u32 (%p7335_p8), %s6313_s23, 4  ;;  %s3469_s24 = int_to_ptr.vmem [resolvable:$true] %s3468_s24 }
0x114a   : > { %5925 = vmatprep.subr.bf16.mxu0 %v5924_v16  ;;  %5969 = vmatprep.subr.bf16.mxu1 %v5924_v16  ;;  %s6147_s25 = scalar_lea.vmem (%p7335_p8), %s3469_s24, 18432  ;;  %p6152_p10 = scmp.lt.s32.totalorder (%p7335_p8), %s3469_s24, %s3469_s24 }
0x114b   :  { %p6148_p9 = scmp.ne.s32.totalorder (%p7335_p8), %s3469_s24, %s6147_s25  ;;  %p6153_p11 = scmp.lt.s32.totalorder (%p7335_p8), %s6147_s25, %s6147_s25 }
0x114d   : > { %5927 = vmatpush3.bf16.msra.mxu0 %v5924_v16  ;;  %5977 = vmatpush3.bf16.msra.mxu1 %v5924_v16  ;;  %p6154_p12 = por (%p7335_p8), %p6153_p11, %p6152_p10 }
0x114e   : > { %5929 = vmatprep.subr.bf16.mxu0 %v5928_v54  ;;  %5970 = vmatprep.subr.bf16.mxu1 %v5928_v54 }
0x114f   :  { %p6155_p13 = pnand (%p7335_p8), %p6154_p12, %p6148_p9 }
0x1151   : > { %5931 = vmatpush3.bf16.msra.mxu0 %v5928_v54  ;;  %5978 = vmatpush3.bf16.msra.mxu1 %v5928_v54 }
0x1152   : > { %5933 = vmatprep.subr.bf16.mxu0 %v5932_v3  ;;  %5971 = vmatprep.subr.bf16.mxu1 %v5932_v3 }
0x1155   : > { %5935 = vmatpush3.bf16.msra.mxu0 %v5932_v3  ;;  %5979 = vmatpush3.bf16.msra.mxu1 %v5932_v3 }
0x1156   : > { %5937 = vmatprep.subr.bf16.mxu0 %v5936_v6  ;;  %5972 = vmatprep.subr.bf16.mxu1 %v5936_v6 }
0x1159   : > { %5939 = vmatpush3.bf16.msra.mxu0 %v5936_v6  ;;  %5980 = vmatpush3.bf16.msra.mxu1 %v5936_v6 }
0x115a   : > { %5941 = vmatprep.subr.bf16.mxu0 %v5940_v30  ;;  %5973 = vmatprep.subr.bf16.mxu1 %v5940_v30 }
0x115d   : > { %5943 = vmatpush3.bf16.msra.mxu0 %v5940_v30  ;;  %5981 = vmatpush3.bf16.msra.mxu1 %v5940_v30 }
0x115e   : > { %5945 = vmatprep.subr.bf16.mxu0 %v5944_v61  ;;  %5974 = vmatprep.subr.bf16.mxu1 %v5944_v61 }
0x1161   : > { %5947 = vmatpush3.bf16.msra.mxu0 %v5944_v61  ;;  %5982 = vmatpush3.bf16.msra.mxu1 %v5944_v61 }
0x1162   : > { %5949 = vmatprep.subr.bf16.mxu0 %v5948_v19  ;;  %5975 = vmatprep.subr.bf16.mxu1 %v5948_v19 }
0x1165   : > { %5951 = vmatpush3.bf16.msra.mxu0 %v5948_v19  ;;  %5983 = vmatpush3.bf16.msra.mxu1 %v5948_v19 }
0x1168   : > { %5289 = vmatmul.mubr.f32.vlgmr.msra.gmra.mrb[0].mxu0 %v6303_v53  ;;  %5301 = vmatmul.mubr.f32.vlgmr.msra.gmra.mrb[0].mxu1 %v6287_v22 }
0x1169   : > { %5288 = vmatprep.mubr.f32.mxu0 %v6271_v57  ;;  %5300 = vmatprep.mubr.f32.mxu1 %v6255_v41 }
0x116c   : > { %5292 = vmatmul.mubr.f32.gmra.mrb[2].mxu0 %v6299_v24  ;;  %5304 = vmatmul.mubr.f32.gmra.mrb[2].mxu1 %v6283_v60 }
0x116d   : > { %5291 = vmatprep.mubr.f32.mxu0 %v6267_v17  ;;  %5303 = vmatprep.mubr.f32.mxu1 %v6251_v36 }
0x1170   : > { %5295 = vmatmul.mubr.f32.gmra.mrb[4].mxu0 %v6295_v0  ;;  %5307 = vmatmul.mubr.f32.gmra.mrb[4].mxu1 %v6279_v55 }
0x1171   : > { %5294 = vmatprep.mubr.f32.mxu0 %v6263_v56  ;;  %5306 = vmatprep.mubr.f32.mxu1 %v6247_v52 }
0x1174   : > { %5298 = vmatmul.mubr.f32.gmra.mrb[6].mxu0 %v6291_v25  ;;  %5310 = vmatmul.mubr.f32.gmra.mrb[6].mxu1 %v6275_v9 }
0x1175   : > { %5309 = vmatprep.mubr.f32.mxu0 %v6243_v51 }
0x123b   : > { %v5290_v53 = vpop.f32.mrb[0].mxu0   ;;  %v5302_v22 = vpop.f32.mrb[0].mxu1  }
0x123c   : > { %3448 = vst [vmem:[%s3446_s21 + $0x8] sm:$0xff] %v5290_v53  ;;  %3456 = vst [vmem:[%s3446_s21 + $0x48] sm:$0xff] %v5302_v22  ;;  %v3366_v57 = vpop.f32.mrb[1].mxu0   ;;  %v3406_v41 = vpop.f32.mrb[1].mxu1  }
0x123d   : > { %3447 = vst [vmem:[%s3446_s21] sm:$0xff] %v3366_v57  ;;  %3455 = vst [vmem:[%s3446_s21 + $0x40] sm:$0xff] %v3406_v41 }
0x123f   : > { %v5293_v24 = vpop.f32.mrb[2].mxu0   ;;  %v5305_v60 = vpop.f32.mrb[2].mxu1  }
0x1240   : > { %3450 = vst [vmem:[%s3446_s21 + $0x18] sm:$0xff] %v5293_v24  ;;  %3458 = vst [vmem:[%s3446_s21 + $0x58] sm:$0xff] %v5305_v60  ;;  %v3376_v17 = vpop.f32.mrb[3].mxu0   ;;  %v3416_v36 = vpop.f32.mrb[3].mxu1  }
0x1241   : > { %3449 = vst [vmem:[%s3446_s21 + $0x10] sm:$0xff] %v3376_v17  ;;  %3457 = vst [vmem:[%s3446_s21 + $0x50] sm:$0xff] %v3416_v36 }
0x1243   : > { %v5296_v0 = vpop.f32.mrb[4].mxu0   ;;  %v5308_v55 = vpop.f32.mrb[4].mxu1   ;;  %3282 = sbr.rel (!%p7335_p8) target bundleno = 4422 (0x1146), region = 37 }
0x1244   : > { %3452 = vst [vmem:[%s3446_s21 + $0x28] sm:$0xff] %v5296_v0  ;;  %3460 = vst [vmem:[%s3446_s21 + $0x68] sm:$0xff] %v5308_v55  ;;  %v3386_v56 = vpop.f32.mrb[5].mxu0   ;;  %v3426_v52 = vpop.f32.mrb[5].mxu1  }
0x1245   : > { %3451 = vst [vmem:[%s3446_s21 + $0x20] sm:$0xff] %v3386_v56  ;;  %3459 = vst [vmem:[%s3446_s21 + $0x60] sm:$0xff] %v3426_v52 }
0x1247   : > { %v5299_v25 = vpop.f32.mrb[6].mxu0   ;;  %v5311_v9 = vpop.f32.mrb[6].mxu1  }
0x1248   : > { %3454 = vst [vmem:[%s3446_s21 + $0x38] sm:$0xff] %v5299_v25  ;;  %3462 = vst [vmem:[%s3446_s21 + $0x78] sm:$0xff] %v5311_v9  ;;  %v3396_v18 = vpop.f32.mrb[7].mxu0   ;;  %v3436_v51 = vpop.f32.mrb[7].mxu1  }
0x1249   : > { %3453 = vst [vmem:[%s3446_s21 + $0x30] sm:$0xff] %v3396_v18  ;;  %3461 = vst [vmem:[%s3446_s21 + $0x70] sm:$0xff] %v3436_v51 }
0x124a   :  { %6158 = shalt.err (!%p6155_p13)
}
0x124b   :  { %s6159_s28 = scalar_lea.hbm %s7391_s1, 18432 }
0x124c   :  { %p6160_p0 = scmp.ne.s32.totalorder %s7391_s1, %s6159_s28  ;;  %p6163_p1 = scmp.lt.u32.totalorder %s6159_s28, %s7391_s1 }
0x124e   :  { %p6165_p2 = pnand %p6163_p1, %p6160_p0 }
0x1250   :  { %6168 = shalt.err (!%p6165_p2)
}
0x1251   :  { %3474 = dma.vmem_to_hbm [thread:$0]  %s3469_s24, 18432, %s7391_s1, [#allocation4], %s6310_s16, %s6310_s16, %s6311_s17  }
0x1252   :  { %6239 = dma.done.wait [#allocation4], 18432  }
0x1253   :  { %6240 = vsyncadd [#allocation4], 4294948864 }
0x1254   :  { %3478 = vsyncpa [#allocation3], 1 }
0x1255   :  { %3479 = vsyncpa [#allocation4], 1 }

</bundles_post_ra>
